<compile_context>
chip_gen: v6e
topology: v6e:2x2x1
jax: 0.10.0
libtpu: 0.0.40
codegen_flags: <defaults>
</compile_context>

<pallas_src>
import functools

import jax
import jax.numpy as jnp
from jax.experimental import pallas as pl
from jax.experimental.pallas import tpu as pltpu


def _round_up(n, m):
    return ((n + m - 1) // m) * m


def _largest_divisor_leq(n, cap):
    for d in range(min(n, cap), 0, -1):
        if n % d == 0:
            return d
    return 1


def _pick_row_tile(h_out, w_out, cin, cop, vmem_budget=8 << 20):
    # f32 bytes resident per output row inside one grid step:
    #   depthwise intermediate (w_out*cin) + double-buffered output block (2*w_out*cop)
    per_row = 4 * (w_out * cin + 2 * w_out * cop)
    cap = max(1, vmem_budget // max(per_row, 1))
    cap = int(min(cap, h_out, 64))
    # TODO(synk): if h_out is prime and the VMEM cap forces cap < h_out this falls
    # back to 1-row tiles; a ragged last tile (cdiv grid + masked write) would fix it.
    return _largest_divisor_leq(h_out, cap)


# ----------------------------------------------------------------------------
# Fused kernel: depthwise 3x3 (+shift+ReLU) -> pointwise 1x1 (+shift+ReLU)
# ----------------------------------------------------------------------------
def _fused_dw_pw_kernel(x_ref, w_dw_ref, b1_ref, w_pw_ref, b2_ref, o_ref,
                        *, th, w_out, stride):
    # x_ref:    (1, H+2, W+2, Cin)  padded NHWC image for one batch element
    # w_dw_ref: (3, 3, Cin)         depthwise filter with BN1 scale folded in
    # b1_ref:   (1, Cin)            BN1 shift
    # w_pw_ref: (Cin, Cop)          pointwise filter with BN2 scale folded in (Cout padded)
    # b2_ref:   (1, Cop)            BN2 shift (padded)
    # o_ref:    (1, th, w_out, Cop)
    i = pl.program_id(1)
    row0 = pl.multiple_of(i * th * stride, th * stride)  # first padded input row of tile
    cin = x_ref.shape[-1]
    cop = o_ref.shape[-1]

    w_dw = w_dw_ref[...]                                  # (3, 3, Cin)
    b1 = b1_ref[...]                                      # (1, Cin)
    b2 = b2_ref[...]                                      # (1, Cop)

    # ---- depthwise 3x3 (stride applied directly on the input window) ----
    acc = jnp.zeros((th, w_out, cin), jnp.float32)
    for kh in range(3):
        for kw in range(3):
            if stride == 1:
                win = x_ref[0, pl.ds(row0 + kh, th), pl.ds(kw, w_out), :]
            else:
                win = x_ref[0, pl.ds(row0 + kh, th, stride),
                            pl.ds(kw, w_out, stride), :]
            acc = acc + win * w_dw[kh, kw]
    dw = jnp.maximum(acc + b1, 0.0)                       # (th, w_out, cin), stays in VMEM

    # ---- pointwise 1x1 as an MXU matmul over channels ----
    y = jnp.dot(dw.reshape(th * w_out, cin), w_pw_ref[...],
                preferred_element_type=jnp.float32)       # (th*w_out, cop)
    y = jnp.maximum(y + b2, 0.0)
    o_ref[0] = y.reshape(th, w_out, cop)


def fused_dw_pw(x_nhwc, w_dw, b1, w_pw, b2, *, stride=1):
    """x_nhwc: (B, H, W, Cin) f32; w_dw: (3, 3, Cin) (BN1 scale folded);
    b1: (Cin,); w_pw: (Cin, Cout) (BN2 scale folded); b2: (Cout,)."""
    B, H, W, Cin = x_nhwc.shape
    Cout = w_pw.shape[1]
    H_out = (H - 1) // stride + 1
    W_out = (W - 1) // stride + 1

    # Only the output channel dim is padded (lane-dense stores); no-op for Cout%128==0.
    Cop = _round_up(Cout, 128)

    x_p = jnp.pad(x_nhwc, ((0, 0), (1, 1), (1, 1), (0, 0)))      # 1-pixel spatial halo
    b1_r = b1.reshape(1, Cin)
    w_pw_p = jnp.pad(w_pw, ((0, 0), (0, Cop - Cout)))
    b2_p = jnp.pad(b2, (0, Cop - Cout)).reshape(1, Cop)

    Hp, Wp = H + 2, W + 2
    th = _pick_row_tile(H_out, W_out, Cin, Cop)   # output rows per grid step
    n_tiles = H_out // th

    kernel = functools.partial(_fused_dw_pw_kernel,
                               th=th, w_out=W_out, stride=stride)
    out = pl.pallas_call(
        kernel,
        out_shape=jax.ShapeDtypeStruct((B, H_out, W_out, Cop), jnp.float32),
        grid_spec=pltpu.PrefetchScalarGridSpec(
            num_scalar_prefetch=0,
            grid=(B, n_tiles),
            in_specs=[
                # Whole padded image per batch; block index only depends on b, so it
                # is not re-fetched across the inner row-tile axis.
                pl.BlockSpec((1, Hp, Wp, Cin), lambda b, i: (b, 0, 0, 0)),
                pl.BlockSpec((3, 3, Cin), lambda b, i: (0, 0, 0)),
                pl.BlockSpec((1, Cin), lambda b, i: (0, 0)),
                pl.BlockSpec((Cin, Cop), lambda b, i: (0, 0)),
                pl.BlockSpec((1, Cop), lambda b, i: (0, 0)),
            ],
            out_specs=pl.BlockSpec((1, th, W_out, Cop),
                                   lambda b, i: (b, i, 0, 0)),
        ),
        compiler_params=pltpu.CompilerParams(
            dimension_semantics=("parallel", "parallel")),
    )(x_p, w_dw, b1_r, w_pw_p, b2_p)

    if Cop != Cout:
        out = out[..., :Cout]
    return out


# ----------------------------------------------------------------------------
# Full module wrapper (_DepthwiseConv forward)
# ----------------------------------------------------------------------------
def fold_bn(gamma, beta, mean, var, eps=1e-5):
    scale = gamma / jnp.sqrt(var + eps)
    shift = beta - mean * scale
    return scale, shift


def depthwise_conv_forward(x_nchw, params, stride=1):
    """x_nchw: (B, Cin, H, W) float32. Returns (B, Cout, Ho, Wo)."""
    x = jnp.transpose(x_nchw, (0, 2, 3, 1)).astype(jnp.float32)  # NCHW -> NHWC

    s1, b1 = fold_bn(params["bn1_gamma"], params["bn1_beta"],
                     params["bn1_mean"], params["bn1_var"])
    s2, b2 = fold_bn(params["bn2_gamma"], params["bn2_beta"],
                     params["bn2_mean"], params["bn2_var"])

    # Fold BN scales into the conv weights: (sum w x)*s + b == sum (w*s) x + b.
    w_dw = params["w_dw"] * s1           # (3, 3, Cin) * (Cin,)
    w_pw = params["w_pw"] * s2[None, :]  # (Cin, Cout) * (Cout,)

    y = fused_dw_pw(x, w_dw, b1, w_pw, b2, stride=stride)
    return jnp.transpose(y, (0, 3, 1, 2))  # NHWC -> NCHW


def init_params(key, in_channels, out_channels):
    ks = jax.random.split(key, 6)
    # PyTorch depthwise weight (Cin, 1, 3, 3) -> stored as (3, 3, Cin)
    w_dw_t = jax.random.normal(ks[0], (in_channels, 1, 3, 3), jnp.float32) * 0.1
    w_dw = jnp.transpose(w_dw_t[:, 0], (1, 2, 0))
    # PyTorch pointwise weight (Cout, Cin, 1, 1) -> stored as (Cin, Cout)
    w_pw_t = jax.random.normal(ks[1], (out_channels, in_channels, 1, 1),
                               jnp.float32) * 0.1
    w_pw = jnp.transpose(w_pw_t[:, :, 0, 0], (1, 0))
    return {
        "w_dw": w_dw,
        "bn1_gamma": jax.random.uniform(ks[2], (in_channels,), jnp.float32,
                                        0.5, 1.5),
        "bn1_beta": jax.random.normal(ks[3], (in_channels,), jnp.float32) * 0.1,
        "bn1_mean": jnp.zeros((in_channels,), jnp.float32),
        "bn1_var": jnp.ones((in_channels,), jnp.float32),
        "w_pw": w_pw,
        "bn2_gamma": jax.random.uniform(ks[4], (out_channels,), jnp.float32,
                                        0.5, 1.5),
        "bn2_beta": jax.random.normal(ks[5], (out_channels,),
                                      jnp.float32) * 0.1,
        "bn2_mean": jnp.zeros((out_channels,), jnp.float32),
        "bn2_var": jnp.ones((out_channels,), jnp.float32),
    }


if __name__ == "__main__":
    key = jax.random.PRNGKey(0)
    B, Cin, Cout, H, W, stride = 2, 8, 16, 16, 16, 1

    kx, kp = jax.random.split(key)
    x = jax.random.normal(kx, (B, Cin, H, W), jnp.float32)
    params = init_params(kp, Cin, Cout)

    out = depthwise_conv_forward(x, params, stride=stride)
    out = jax.block_until_ready(out)
    assert out.shape == (B, Cout, H // stride, W // stride)

    # reference check in plain JAX (unfused, BN applied after each conv)
    xh = jnp.transpose(x, (0, 2, 3, 1))
    xp = jnp.pad(xh, ((0, 0), (1, 1), (1, 1), (0, 0)))
    ref = jnp.zeros((B, H, W, Cin), jnp.float32)
    for kh in range(3):
        for kw in range(3):
            ref = ref + xp[:, kh:kh + H, kw:kw + W, :] * params["w_dw"][kh, kw]
    s1, b1 = fold_bn(params["bn1_gamma"], params["bn1_beta"],
                     params["bn1_mean"], params["bn1_var"])
    ref = jnp.maximum(ref * s1 + b1, 0.0)[:, ::stride, ::stride, :]
    s2, b2 = fold_bn(params["bn2_gamma"], params["bn2_beta"],
                     params["bn2_mean"], params["bn2_var"])
    ref = jnp.maximum(ref @ params["w_pw"] * s2 + b2, 0.0)
    ref = jnp.transpose(ref, (0, 3, 1, 2))
    assert jnp.allclose(out, ref, atol=1e-4, rtol=1e-4)

    print("KERNEL_OK")
</pallas_src>

<mosaic_0001>
module attributes {stable_mosaic.version = 11 : i64} {
  func.func @_fused_dw_pw_kernel(%arg0: i32, %arg1: i32, %arg2: memref<1x18x18x8xf32, #tpu.memory_space<vmem>>, %arg3: memref<3x3x8xf32, #tpu.memory_space<vmem>>, %arg4: memref<1x8xf32, #tpu.memory_space<vmem>>, %arg5: memref<8x128xf32, #tpu.memory_space<vmem>>, %arg6: memref<1x128xf32, #tpu.memory_space<vmem>>, %arg7: memref<1x16x16x128xf32, #tpu.memory_space<vmem>>) attributes {dimension_semantics = [#tpu.dimension_semantics<parallel>, #tpu.dimension_semantics<parallel>], iteration_bounds = array<i64: 2, 1>, scalar_prefetch = 0 : i64, scratch_operands = 0 : i64, tpu.core_type = #tpu.core_type<tc>, window_params = [{transform_indices = @transform_0, window_bounds = array<i64: 1, 18, 18, 8>}, {pipeline_mode = #tpu.pipeline_mode<synchronous>, transform_indices = @transform_1, window_bounds = array<i64: 3, 3, 8>}, {pipeline_mode = #tpu.pipeline_mode<synchronous>, transform_indices = @transform_2, window_bounds = array<i64: 1, 8>}, {pipeline_mode = #tpu.pipeline_mode<synchronous>, transform_indices = @transform_3, window_bounds = array<i64: 8, 128>}, {pipeline_mode = #tpu.pipeline_mode<synchronous>, transform_indices = @transform_4, window_bounds = array<i64: 1, 128>}, {transform_indices = @transform_5, window_bounds = array<i64: 1, 16, 16, 128>}]} {
    %c16_i32 = arith.constant 16 : i32
    %0 = arith.muli %arg1, %c16_i32 : i32
    %c1_i32 = arith.constant 1 : i32
    %1 = arith.muli %0, %c1_i32 : i32
    %2 = tpu.assume_multiple %1, 16 : i32
    %c0 = arith.constant 0 : index
    %c0_0 = arith.constant 0 : index
    %c0_1 = arith.constant 0 : index
    %3 = vector.load %arg3[%c0, %c0_0, %c0_1] : memref<3x3x8xf32, #tpu.memory_space<vmem>>, vector<3x3x8xf32>
    %c0_2 = arith.constant 0 : index
    %c0_3 = arith.constant 0 : index
    %4 = vector.load %arg4[%c0_2, %c0_3] : memref<1x8xf32, #tpu.memory_space<vmem>>, vector<1x8xf32>
    %c0_4 = arith.constant 0 : index
    %c0_5 = arith.constant 0 : index
    %5 = vector.load %arg6[%c0_4, %c0_5] : memref<1x128xf32, #tpu.memory_space<vmem>>, vector<1x128xf32>
    %cst = arith.constant 0.000000e+00 : f32
    %6 = vector.broadcast %cst : f32 to vector<16x16x8xf32>
    %c0_i32 = arith.constant 0 : i32
    %7 = arith.addi %2, %c0_i32 : i32
    %c0_6 = arith.constant 0 : index
    %8 = arith.index_cast %7 : i32 to index
    %c0_7 = arith.constant 0 : index
    %c0_8 = arith.constant 0 : index
    %9 = vector.load %arg2[%c0_6, %8, %c0_7, %c0_8] : memref<1x18x18x8xf32, #tpu.memory_space<vmem>>, vector<1x16x16x8xf32>
    %10 = vector.shape_cast %9 : vector<1x16x16x8xf32> to vector<16x16x8xf32>
    %11 = vector.extract_strided_slice %3 {offsets = [0, 0, 0], sizes = [1, 1, 8], strides = [1, 1, 1]} : vector<3x3x8xf32> to vector<1x1x8xf32>
    %12 = vector.shape_cast %11 : vector<1x1x8xf32> to vector<8xf32>
    %13 = vector.shape_cast %12 : vector<8xf32> to vector<1x1x8xf32>
    %14 = vector.broadcast %13 : vector<1x1x8xf32> to vector<16x16x8xf32>
    %15 = arith.mulf %10, %14 : vector<16x16x8xf32>
    %16 = arith.addf %6, %15 : vector<16x16x8xf32>
    %c0_i32_9 = arith.constant 0 : i32
    %17 = arith.addi %2, %c0_i32_9 : i32
    %c0_10 = arith.constant 0 : index
    %18 = arith.index_cast %17 : i32 to index
    %c1 = arith.constant 1 : index
    %c0_11 = arith.constant 0 : index
    %19 = vector.load %arg2[%c0_10, %18, %c1, %c0_11] : memref<1x18x18x8xf32, #tpu.memory_space<vmem>>, vector<1x16x16x8xf32>
    %20 = vector.shape_cast %19 : vector<1x16x16x8xf32> to vector<16x16x8xf32>
    %21 = vector.extract_strided_slice %3 {offsets = [0, 1, 0], sizes = [1, 1, 8], strides = [1, 1, 1]} : vector<3x3x8xf32> to vector<1x1x8xf32>
    %22 = vector.shape_cast %21 : vector<1x1x8xf32> to vector<8xf32>
    %23 = vector.shape_cast %22 : vector<8xf32> to vector<1x1x8xf32>
    %24 = vector.broadcast %23 : vector<1x1x8xf32> to vector<16x16x8xf32>
    %25 = arith.mulf %20, %24 : vector<16x16x8xf32>
    %26 = arith.addf %16, %25 : vector<16x16x8xf32>
    %c0_i32_12 = arith.constant 0 : i32
    %27 = arith.addi %2, %c0_i32_12 : i32
    %c0_13 = arith.constant 0 : index
    %28 = arith.index_cast %27 : i32 to index
    %c2 = arith.constant 2 : index
    %c0_14 = arith.constant 0 : index
    %29 = vector.load %arg2[%c0_13, %28, %c2, %c0_14] : memref<1x18x18x8xf32, #tpu.memory_space<vmem>>, vector<1x16x16x8xf32>
    %30 = vector.shape_cast %29 : vector<1x16x16x8xf32> to vector<16x16x8xf32>
    %31 = vector.extract_strided_slice %3 {offsets = [0, 2, 0], sizes = [1, 1, 8], strides = [1, 1, 1]} : vector<3x3x8xf32> to vector<1x1x8xf32>
    %32 = vector.shape_cast %31 : vector<1x1x8xf32> to vector<8xf32>
    %33 = vector.shape_cast %32 : vector<8xf32> to vector<1x1x8xf32>
    %34 = vector.broadcast %33 : vector<1x1x8xf32> to vector<16x16x8xf32>
    %35 = arith.mulf %30, %34 : vector<16x16x8xf32>
    %36 = arith.addf %26, %35 : vector<16x16x8xf32>
    %c1_i32_15 = arith.constant 1 : i32
    %37 = arith.addi %2, %c1_i32_15 : i32
    %c0_16 = arith.constant 0 : index
    %38 = arith.index_cast %37 : i32 to index
    %c0_17 = arith.constant 0 : index
    %c0_18 = arith.constant 0 : index
    %39 = vector.load %arg2[%c0_16, %38, %c0_17, %c0_18] : memref<1x18x18x8xf32, #tpu.memory_space<vmem>>, vector<1x16x16x8xf32>
    %40 = vector.shape_cast %39 : vector<1x16x16x8xf32> to vector<16x16x8xf32>
    %41 = vector.extract_strided_slice %3 {offsets = [1, 0, 0], sizes = [1, 1, 8], strides = [1, 1, 1]} : vector<3x3x8xf32> to vector<1x1x8xf32>
    %42 = vector.shape_cast %41 : vector<1x1x8xf32> to vector<8xf32>
    %43 = vector.shape_cast %42 : vector<8xf32> to vector<1x1x8xf32>
    %44 = vector.broadcast %43 : vector<1x1x8xf32> to vector<16x16x8xf32>
    %45 = arith.mulf %40, %44 : vector<16x16x8xf32>
    %46 = arith.addf %36, %45 : vector<16x16x8xf32>
    %c1_i32_19 = arith.constant 1 : i32
    %47 = arith.addi %2, %c1_i32_19 : i32
    %c0_20 = arith.constant 0 : index
    %48 = arith.index_cast %47 : i32 to index
    %c1_21 = arith.constant 1 : index
    %c0_22 = arith.constant 0 : index
    %49 = vector.load %arg2[%c0_20, %48, %c1_21, %c0_22] : memref<1x18x18x8xf32, #tpu.memory_space<vmem>>, vector<1x16x16x8xf32>
    %50 = vector.shape_cast %49 : vector<1x16x16x8xf32> to vector<16x16x8xf32>
    %51 = vector.extract_strided_slice %3 {offsets = [1, 1, 0], sizes = [1, 1, 8], strides = [1, 1, 1]} : vector<3x3x8xf32> to vector<1x1x8xf32>
    %52 = vector.shape_cast %51 : vector<1x1x8xf32> to vector<8xf32>
    %53 = vector.shape_cast %52 : vector<8xf32> to vector<1x1x8xf32>
    %54 = vector.broadcast %53 : vector<1x1x8xf32> to vector<16x16x8xf32>
    %55 = arith.mulf %50, %54 : vector<16x16x8xf32>
    %56 = arith.addf %46, %55 : vector<16x16x8xf32>
    %c1_i32_23 = arith.constant 1 : i32
    %57 = arith.addi %2, %c1_i32_23 : i32
    %c0_24 = arith.constant 0 : index
    %58 = arith.index_cast %57 : i32 to index
    %c2_25 = arith.constant 2 : index
    %c0_26 = arith.constant 0 : index
    %59 = vector.load %arg2[%c0_24, %58, %c2_25, %c0_26] : memref<1x18x18x8xf32, #tpu.memory_space<vmem>>, vector<1x16x16x8xf32>
    %60 = vector.shape_cast %59 : vector<1x16x16x8xf32> to vector<16x16x8xf32>
    %61 = vector.extract_strided_slice %3 {offsets = [1, 2, 0], sizes = [1, 1, 8], strides = [1, 1, 1]} : vector<3x3x8xf32> to vector<1x1x8xf32>
    %62 = vector.shape_cast %61 : vector<1x1x8xf32> to vector<8xf32>
    %63 = vector.shape_cast %62 : vector<8xf32> to vector<1x1x8xf32>
    %64 = vector.broadcast %63 : vector<1x1x8xf32> to vector<16x16x8xf32>
    %65 = arith.mulf %60, %64 : vector<16x16x8xf32>
    %66 = arith.addf %56, %65 : vector<16x16x8xf32>
    %c2_i32 = arith.constant 2 : i32
    %67 = arith.addi %2, %c2_i32 : i32
    %c0_27 = arith.constant 0 : index
    %68 = arith.index_cast %67 : i32 to index
    %c0_28 = arith.constant 0 : index
    %c0_29 = arith.constant 0 : index
    %69 = vector.load %arg2[%c0_27, %68, %c0_28, %c0_29] : memref<1x18x18x8xf32, #tpu.memory_space<vmem>>, vector<1x16x16x8xf32>
    %70 = vector.shape_cast %69 : vector<1x16x16x8xf32> to vector<16x16x8xf32>
    %71 = vector.extract_strided_slice %3 {offsets = [2, 0, 0], sizes = [1, 1, 8], strides = [1, 1, 1]} : vector<3x3x8xf32> to vector<1x1x8xf32>
    %72 = vector.shape_cast %71 : vector<1x1x8xf32> to vector<8xf32>
    %73 = vector.shape_cast %72 : vector<8xf32> to vector<1x1x8xf32>
    %74 = vector.broadcast %73 : vector<1x1x8xf32> to vector<16x16x8xf32>
    %75 = arith.mulf %70, %74 : vector<16x16x8xf32>
    %76 = arith.addf %66, %75 : vector<16x16x8xf32>
    %c2_i32_30 = arith.constant 2 : i32
    %77 = arith.addi %2, %c2_i32_30 : i32
    %c0_31 = arith.constant 0 : index
    %78 = arith.index_cast %77 : i32 to index
    %c1_32 = arith.constant 1 : index
    %c0_33 = arith.constant 0 : index
    %79 = vector.load %arg2[%c0_31, %78, %c1_32, %c0_33] : memref<1x18x18x8xf32, #tpu.memory_space<vmem>>, vector<1x16x16x8xf32>
    %80 = vector.shape_cast %79 : vector<1x16x16x8xf32> to vector<16x16x8xf32>
    %81 = vector.extract_strided_slice %3 {offsets = [2, 1, 0], sizes = [1, 1, 8], strides = [1, 1, 1]} : vector<3x3x8xf32> to vector<1x1x8xf32>
    %82 = vector.shape_cast %81 : vector<1x1x8xf32> to vector<8xf32>
    %83 = vector.shape_cast %82 : vector<8xf32> to vector<1x1x8xf32>
    %84 = vector.broadcast %83 : vector<1x1x8xf32> to vector<16x16x8xf32>
    %85 = arith.mulf %80, %84 : vector<16x16x8xf32>
    %86 = arith.addf %76, %85 : vector<16x16x8xf32>
    %c2_i32_34 = arith.constant 2 : i32
    %87 = arith.addi %2, %c2_i32_34 : i32
    %c0_35 = arith.constant 0 : index
    %88 = arith.index_cast %87 : i32 to index
    %c2_36 = arith.constant 2 : index
    %c0_37 = arith.constant 0 : index
    %89 = vector.load %arg2[%c0_35, %88, %c2_36, %c0_37] : memref<1x18x18x8xf32, #tpu.memory_space<vmem>>, vector<1x16x16x8xf32>
    %90 = vector.shape_cast %89 : vector<1x16x16x8xf32> to vector<16x16x8xf32>
    %91 = vector.extract_strided_slice %3 {offsets = [2, 2, 0], sizes = [1, 1, 8], strides = [1, 1, 1]} : vector<3x3x8xf32> to vector<1x1x8xf32>
    %92 = vector.shape_cast %91 : vector<1x1x8xf32> to vector<8xf32>
    %93 = vector.shape_cast %92 : vector<8xf32> to vector<1x1x8xf32>
    %94 = vector.broadcast %93 : vector<1x1x8xf32> to vector<16x16x8xf32>
    %95 = arith.mulf %90, %94 : vector<16x16x8xf32>
    %96 = arith.addf %86, %95 : vector<16x16x8xf32>
    %97 = vector.shape_cast %4 : vector<1x8xf32> to vector<1x1x8xf32>
    %98 = vector.broadcast %97 : vector<1x1x8xf32> to vector<16x16x8xf32>
    %99 = arith.addf %96, %98 : vector<16x16x8xf32>
    %cst_38 = arith.constant 0.000000e+00 : f32
    %100 = vector.broadcast %cst_38 : f32 to vector<16x16x8xf32>
    %101 = arith.maximumf %99, %100 : vector<16x16x8xf32>
    %102 = vector.shape_cast %101 : vector<16x16x8xf32> to vector<256x8xf32>
    %c0_39 = arith.constant 0 : index
    %c0_40 = arith.constant 0 : index
    %103 = vector.load %arg5[%c0_39, %c0_40] : memref<8x128xf32, #tpu.memory_space<vmem>>, vector<8x128xf32>
    %cst_41 = arith.constant dense<0.000000e+00> : vector<256x128xf32>
    %104 = tpu.matmul %102, %103, %cst_41 {dimension_numbers = #tpu.dot_dimension_numbers<[1], [0], [0], [1], [0, 0, 1, 1], [], []>} : vector<256x8xf32>, vector<8x128xf32>, vector<256x128xf32> -> vector<256x128xf32>
    %105 = vector.broadcast %5 : vector<1x128xf32> to vector<256x128xf32>
    %106 = arith.addf %104, %105 : vector<256x128xf32>
    %cst_42 = arith.constant 0.000000e+00 : f32
    %107 = vector.broadcast %cst_42 : f32 to vector<256x128xf32>
    %108 = arith.maximumf %106, %107 : vector<256x128xf32>
    %109 = vector.shape_cast %108 : vector<256x128xf32> to vector<16x16x128xf32>
    %c0_43 = arith.constant 0 : index
    %c0_44 = arith.constant 0 : index
    %c0_45 = arith.constant 0 : index
    %c0_46 = arith.constant 0 : index
    %110 = vector.load %arg7[%c0_43, %c0_44, %c0_45, %c0_46] : memref<1x16x16x128xf32, #tpu.memory_space<vmem>>, vector<1x16x16x128xf32>
    %111 = vector.shape_cast %110 : vector<1x16x16x128xf32> to vector<16x16x128xf32>
    %112 = vector.shape_cast %109 : vector<16x16x128xf32> to vector<1x16x16x128xf32>
    tpu.vector_store %arg7[%c0_43, %c0_44, %c0_45, %c0_46], %112 {strides = array<i32>} : memref<1x16x16x128xf32, #tpu.memory_space<vmem>>, vector<1x16x16x128xf32>,
    return
  }
  func.func @transform_0(%arg0: i32, %arg1: i32) -> (i32, i32, i32, i32) {
    %c0_i32 = arith.constant 0 : i32
    %c0_i32_0 = arith.constant 0 : i32
    %c0_i32_1 = arith.constant 0 : i32
    %c0_i32_2 = arith.constant 0 : i32
    return %arg0, %c0_i32, %c0_i32_0, %c0_i32_1 : i32, i32, i32, i32
  }
  func.func @transform_1(%arg0: i32, %arg1: i32) -> (i32, i32, i32) {
    %c0_i32 = arith.constant 0 : i32
    %c0_i32_0 = arith.constant 0 : i32
    %c0_i32_1 = arith.constant 0 : i32
    %c0_i32_2 = arith.constant 0 : i32
    return %c0_i32, %c0_i32_0, %c0_i32_1 : i32, i32, i32
  }
  func.func @transform_2(%arg0: i32, %arg1: i32) -> (i32, i32) {
    %c0_i32 = arith.constant 0 : i32
    %c0_i32_0 = arith.constant 0 : i32
    %c0_i32_1 = arith.constant 0 : i32
    return %c0_i32, %c0_i32_0 : i32, i32
  }
  func.func @transform_3(%arg0: i32, %arg1: i32) -> (i32, i32) {
    %c0_i32 = arith.constant 0 : i32
    %c0_i32_0 = arith.constant 0 : i32
    %c0_i32_1 = arith.constant 0 : i32
    return %c0_i32, %c0_i32_0 : i32, i32
  }
  func.func @transform_4(%arg0: i32, %arg1: i32) -> (i32, i32) {
    %c0_i32 = arith.constant 0 : i32
    %c0_i32_0 = arith.constant 0 : i32
    %c0_i32_1 = arith.constant 0 : i32
    return %c0_i32, %c0_i32_0 : i32, i32
  }
  func.func @transform_5(%arg0: i32, %arg1: i32) -> (i32, i32, i32, i32) {
    %c0_i32 = arith.constant 0 : i32
    %c0_i32_0 = arith.constant 0 : i32
    %c0_i32_1 = arith.constant 0 : i32
    return %arg0, %arg1, %c0_i32, %c0_i32_0 : i32, i32, i32, i32
  }
}

</mosaic_0001>

<bundles_post_ra>
// kernel: tpu_custom_call.1
= control target key start
LH: loop header
LB: loop body
LE: loop exit
PB: predicated region body
PF: predicated region fallthrough
CT: control target
= control target key end

     0   :  { %10 = vsyncpa [#allocation3], 0  ;;  %s3367_s0 = inlined_call_operand.vmem [shape: f32[2,18,18,8], index: 0, kind: input, shape index: {}]   ;;  %s3368_s1 = inlined_call_operand.vmem [shape: f32[3,3,8], index: 1, kind: input, shape index: {}]   ;;  %s3369_s2 = inlined_call_operand.vmem [shape: f32[1,8], index: 2, kind: input, shape index: {}]   ;;  %s3370_s3 = inlined_call_operand.vmem [shape: f32[8,128], index: 3, kind: input, shape index: {}]   ;;  %s3371_s4 = inlined_call_operand.vmem [shape: f32[1,128], index: 4, kind: input, shape index: {}]   ;;  %s3372_s5 = inlined_call_operand.hbm [shape: f32[2,16,16,128], index: 5, kind: output, shape index: {}]  }
   0x1   :  { %12 = vsyncpa [#allocation3 + $0x1], 0  ;;  %s2209_s18 = smov 0   ;;  %s2211_s19 = smov 0  }
   0x2   :  { %s2213_s20 = smov 0   ;;  %s2215_s21 = smov 0  }
   0x3   :  { %s2217_s22 = smov 0   ;;  %s2219_s23 = smov 0  }
   0x4 LB: > { %s1715_s24 = sadd.s32 4294967295, %s2174_s23   ;;  %s1716_s25 = sadd.s32 4294967294, %s2174_s23   ;;  %s2174_s23 = sphi %s2219_s23, %s18_s23   ;;  %s2170_s22 = sphi %s2217_s22, %s3379_s22   ;;  %s2166_s21 = sphi %s2215_s21, %s3378_s21   ;;  %s2162_s20 = sphi %s2213_s20, %s3377_s20   ;;  %s2158_s19 = sphi %s2211_s19, %s3376_s19   ;;  %s2154_s18 = sphi %s2209_s18, %s3375_s18  }
   0x5   : > { %s30_s26 = sadd.s32 1, %s2170_s22  ;;  %s149_s27 = sadd.s32 1, %s2162_s20 }
   0x6   : > { %p32_p0 = scmp.ge.s32.totalorder %s30_s26, 2  ;;  %p159_p1 = scmp.ne.s32.totalorder %s2162_s20, %s2158_s19 }
   0x7   : > { %p160_p2 = scmp.eq.s32.totalorder %s1715_s24, 1  ;;  %p165_p3 = scmp.ne.s32.totalorder %s2158_s19, %s2154_s18 }
   0x8   : > { %s3381_s26 = smov (%p32_p0, %s30_s26), 0  ;;  %p166_p5 = scmp.eq.s32.totalorder %s1716_s25, 1 }
   0x9   : > { %p2249_p4 = por %p160_p2, %p159_p1  ;;  %s144_s29 = ssub.s32 %s2170_s22, %s3381_s26 }
   0xa   : > { %p1719_p6 = scmp.ge.s32.totalorder %s2174_s23, 1  ;;  %p147_p7 = scmp.eq.s32.totalorder %s144_s29, 0 }
   0xb   : > { %p2256_p8 = por %p166_p5, %p165_p3  ;;  %p204_p9 = scmp.lt.s32.totalorder %s2174_s23, 3 }
   0xc   : > { %s2262_s6 = scalar_select %p147_p7, %s2162_s20, %s149_s27  }
   0xd   : > { %p205_p10 = pnand %p1719_p6, %p204_p9 }
   0xe   : > { %p232_p11 = scmp.lt.s32.totalorder (!%p205_p10), %s2166_s21, 1  ;;  %s2176_s27 = smov (!%p205_p10), [#allocation2]  }
   0xf   : > { %208 = sbr.rel (%p205_p10) target bundleno = 404 (0x194), region = 40  ;;  %s2102_s29 = sshll.u32 (!%p205_p10), %s2176_s27, 4  ;;  %s2103_s29 = int_to_ptr.vmem [resolvable:$false] %s2102_s29 }
  0x10   : > { %s2104_s7 = scalar_lea.vmem (!%p205_p10), %s2103_s29, 8192 }
  0x14   : > { %v1222_v0 = vld [vmem:[%s3370_s3] sm:$0xff]  ;;  %v278_v1 = vlaneseq  ;;  %s233_s9 = scalar_select %p232_p11, %s2166_s21, 1  ;;  %v241_v5 = vld [vmem:[%s3368_s1 + $0x8] sm:$0x7]  ;;  %vm1229_vm0 = vcmask 64512  }
  0x15   : > { %1987 = vmatprep.subr.mxu0 %v1222_v0  ;;  %2037 = vmatprep.subr.mxu1 %v1222_v0  ;;  %v239_v3 = vld [vmem:[%s3368_s1] sm:$0x7]  ;;  %v240_v4 = vld [vmem:[%s3368_s1 + $0x4] sm:$0x7] }
  0x16   : > { %1988 = vmatpush3.msra.mxu0 %v1222_v0  ;;  %2038 = vmatpush3.msra.mxu1 %v1222_v0  ;;  %v279_v2 = vshrl.u32 %v278_v1, 7  ;;  %s2039_s14 = smul.u32 432, %s233_s9  ;;  %s229_s9 = sand.u32 1, %s2158_s19  }
  0x17   : > { %s1720_s12 = sshll.u32 %s229_s9, 8 }
  0x18   : > { %v280_v6 = vsub.s32 0, %v279_v2  ;;  %v380_v7 = vsub.s32 1, %v279_v2  ;;  %v480_v8 = vsub.s32 2, %v279_v2  ;;  %s2281_s25 = scalar_lea.vmem %s3367_s0, %s2039_s14  ;;  %s3248_s13 = scalar_lea.vmem [#allocation2], %s1720_s12 }
  0x19   : > { %v246_v13 = vld [vmem:[%s2281_s25] sm:$0xff]  ;;  %v1722_v23 = vld [vmem:[%s2281_s25 + $0x18] sm:$0xff]  ;;  %v2314_v28 = vld [vmem:[%s2281_s25 + $0x30] sm:$0xff]  ;;  %s1953_s14 = sshll.u32 %s2166_s21, 12  ;;  %s1632_s15 = sshll.u32 %s3248_s13, 4  ;;  %s3316_s15 = int_to_ptr.vmem [resolvable:$true] %s1632_s15 }
  0x1a   : > { %v2283_v9 = vrot.slane %v239_v3, %v280_v6  ;;  %v2285_v10 = vrot.slane %v239_v3, %v380_v7  ;;  %v2287_v11 = vrot.slane %v239_v3, %v480_v8  ;;  %v2289_v12 = vrot.slane %v240_v4, %v280_v6  ;;  %v346_v14 = vld [vmem:[%s2281_s25 + $0x1] sm:$0xff]  ;;  %v1754_v26 = vld [vmem:[%s2281_s25 + $0x19] sm:$0xff]  ;;  %v2328_v37 = vld [vmem:[%s2281_s25 + $0x31] sm:$0xff]  ;;  %s3314_s24 = scalar_lea.hbm %s3372_s5, %s1953_s14  ;;  %s3322_s21 = scalar_lea.sflag [#allocation3], %s229_s9 }
  0x1b   : > { %v446_v15 = vld [vmem:[%s2281_s25 + $0x2] sm:$0xff]  ;;  %v2294_v16 = vrot.slane %v240_v4, %v380_v7  ;;  %v2296_v17 = vrot.slane %v240_v4, %v480_v8  ;;  %v2298_v18 = vrot.slane %v241_v5, %v280_v6  ;;  %v2300_v19 = vrot.slane %v241_v5, %v380_v7  ;;  %v2311_v27 = vld [vmem:[%s2281_s25 + $0x1a] sm:$0xff]  ;;  %v2331_v38 = vld [vmem:[%s2281_s25 + $0x32] sm:$0xff]  ;;  %p2105_p1 = scmp.lt.s32.totalorder %s3316_s15, %s2103_s29 }
  0x1c   : > { %v282_v20 = vmul.f32 %v2283_v9, %v246_v13  ;;  %v382_v21 = vmul.f32 %v2285_v10, %v346_v14  ;;  %v482_v22 = vmul.f32 %v2287_v11, %v446_v15  ;;  %v2306_v24 = vrot.slane %v241_v5, %v480_v8  ;;  %v262_v32 = vld [vmem:[%s2281_s25 + $0xc0] sm:$0xff]  ;;  %v2337_v42 = vld [vmem:[%s2281_s25 + $0xd8] sm:$0xff]  ;;  %v2352_v48 = vld [vmem:[%s2281_s25 + $0xf0] sm:$0xff] }
  0x1d   : > { %v585_v25 = vmul.f32 %v1722_v23, %v2289_v12  ;;  %v685_v30 = vmul.f32 %v1754_v26, %v2294_v16  ;;  %v785_v31 = vmul.f32 %v2311_v27, %v2296_v17  ;;  %v362_v33 = vld [vmem:[%s2281_s25 + $0xc1] sm:$0xff]  ;;  %v2323_v35 = vmul.f32 %v1722_v23, %v2283_v9  ;;  %v2346_v46 = vld [vmem:[%s2281_s25 + $0xd9] sm:$0xff]  ;;  %v347_v55 = vld [vmem:[%s2281_s25 + $0x9] sm:$0xff] }
  0x1e   : > { %v414_v29 = vadd.f32 %v382_v21, %v282_v20  ;;  %v462_v34 = vld [vmem:[%s2281_s25 + $0xc2] sm:$0xff]  ;;  %v888_v36 = vmul.f32 %v2314_v28, %v2298_v18  ;;  %v298_v39 = vmul.f32 %v2283_v9, %v262_v32  ;;  %v398_v40 = vmul.f32 %v2285_v10, %v362_v33  ;;  %v2349_v47 = vld [vmem:[%s2281_s25 + $0xda] sm:$0xff]  ;;  %v447_v56 = vld [vmem:[%s2281_s25 + $0xa] sm:$0xff] }
  0x1f   : > { %v498_v41 = vmul.f32 %v2287_v11, %v462_v34  ;;  %v988_v44 = vmul.f32 %v2328_v37, %v2300_v19  ;;  %v2343_v45 = vmul.f32 %v2331_v38, %v2306_v24  ;;  %v384_v49 = vmul.f32 %v1754_v26, %v2285_v10  ;;  %v247_v54 = vld [vmem:[%s2281_s25 + $0x8] sm:$0xff]  ;;  %v2365_v58 = vld [vmem:[%s2281_s25 + $0xf1] sm:$0xff]  ;;  %v2374_v63 = vld [vmem:[%s2281_s25 + $0x20] sm:$0xff] }
  0x20   : > { %v514_v43 = vadd.f32 %v482_v22, %v414_v29  ;;  %v430_v50 = vadd.f32 %v398_v40, %v298_v39  ;;  %v601_v51 = vmul.f32 %v2337_v42, %v2289_v12  ;;  %v701_v52 = vmul.f32 %v2346_v46, %v2294_v16  ;;  %v2368_v59 = vld [vmem:[%s2281_s25 + $0xf2] sm:$0xff]  ;;  %v2383_v4 = vld [vmem:[%s2281_s25 + $0x21] sm:$0xff]  ;;  %v363_v15 = vld [vmem:[%s2281_s25 + $0xc9] sm:$0xff] }
  0x21   : > { %v801_v53 = vmul.f32 %v2349_v47, %v2296_v17  ;;  %v283_v60 = vmul.f32 %v2283_v9, %v247_v54  ;;  %v383_v61 = vmul.f32 %v2285_v10, %v347_v55  ;;  %v483_v62 = vmul.f32 %v2287_v11, %v447_v56  ;;  %v2386_v5 = vld [vmem:[%s2281_s25 + $0x22] sm:$0xff]  ;;  %v463_v20 = vld [vmem:[%s2281_s25 + $0xca] sm:$0xff]  ;;  %v2398_v23 = vld [vmem:[%s2281_s25 + $0x38] sm:$0xff] }
  0x22   : > { %v617_v57 = vadd.f32 %v585_v25, %v514_v43  ;;  %v530_v0 = vadd.f32 %v498_v41, %v430_v50  ;;  %v904_v1 = vmul.f32 %v2352_v48, %v2298_v18  ;;  %v1004_v2 = vmul.f32 %v2365_v58, %v2300_v19  ;;  %v263_v14 = vld [vmem:[%s2281_s25 + $0xc8] sm:$0xff]  ;;  %v2403_v29 = vld [vmem:[%s2281_s25 + $0xe0] sm:$0xff] }
  0x23   : > { %v1104_v3 = vmul.f32 %v2368_v59, %v2306_v24  ;;  %v415_v7 = vadd.f32 %v383_v61, %v283_v60  ;;  %v586_v8 = vmul.f32 %v2374_v63, %v2289_v12  ;;  %v686_v13 = vmul.f32 %v2383_v4, %v2294_v16  ;;  %v2408_v34 = vld [vmem:[%s2281_s25 + $0x39] sm:$0xff] }
  0x24   : > { %v717_v6 = vadd.f32 %v685_v30, %v617_v57  ;;  %v633_v21 = vadd.f32 %v601_v51, %v530_v0  ;;  %v786_v22 = vmul.f32 %v2386_v5, %v2296_v17  ;;  %v299_v25 = vmul.f32 %v2283_v9, %v263_v14  ;;  %v2414_v43 = vld [vmem:[%s2281_s25 + $0x3a] sm:$0xff]  ;;  %v2426_v57 = vld [vmem:[%s2281_s25 + $0xe2] sm:$0xff] }
  0x25   : > { %v399_v26 = vmul.f32 %v2285_v10, %v363_v15  ;;  %v515_v32 = vadd.f32 %v483_v62, %v415_v7  ;;  %v889_v33 = vmul.f32 %v2398_v23, %v2298_v18  ;;  %v499_v39 = vmul.f32 %v2287_v11, %v463_v20  ;;  %v2419_v51 = vld [vmem:[%s2281_s25 + $0xe1] sm:$0xff] }
  0x26   : > { %v817_v30 = vadd.f32 %v785_v31, %v717_v6  ;;  %v733_v40 = vadd.f32 %v701_v52, %v633_v21  ;;  %v989_v41 = vmul.f32 %v2408_v34, %v2300_v19  ;;  %v602_v31 = vmul.f32 %v2403_v29, %v2289_v12 }
  0x27   : > { %v431_v50 = vadd.f32 %v399_v26, %v299_v25  ;;  %v618_v55 = vadd.f32 %v586_v8, %v515_v32  ;;  %v1089_v56 = vmul.f32 %v2414_v43, %v2306_v24  ;;  %v702_v52 = vmul.f32 %v2419_v51, %v2294_v16  ;;  %v2435_v8 = vld [vmem:[%s2281_s25 + $0xf9] sm:$0xff] }
  0x28   : > { %v920_v54 = vadd.f32 %v888_v36, %v817_v30  ;;  %v833_v60 = vadd.f32 %v801_v53, %v733_v40  ;;  %v802_v62 = vmul.f32 %v2426_v57, %v2296_v17  ;;  %v416_v0 = vadd.f32 %v384_v49, %v2323_v35  ;;  %v2432_v36 = vld [vmem:[%s2281_s25 + $0xf8] sm:$0xff]  ;;  %v2444_v53 = vld [vmem:[%s3369_s2] ss:$0 sm:$0xff] }
  0x29   : > { %v531_v61 = vadd.f32 %v499_v39, %v431_v50  ;;  %v718_v7 = vadd.f32 %v686_v13, %v618_v55  ;;  %v484_v14 = vmul.f32 %v2311_v27, %v2287_v11  ;;  %v587_v15 = vmul.f32 %v2314_v28, %v2289_v12  ;;  %v2452_v13 = vld [vmem:[%s2281_s25 + $0xfa] sm:$0xff]  ;;  %v2464_v55 = vld [vmem:[%s2281_s25 + $0x48] sm:$0xff] }
  0x2a   : > { %v1020_v6 = vadd.f32 %v988_v44, %v920_v54  ;;  %v936_v20 = vadd.f32 %v904_v1, %v833_v60  ;;  %v905_v35 = vmul.f32 %v2432_v36, %v2298_v18  ;;  %v1005_v44 = vmul.f32 %v2435_v8, %v2300_v19 }
  0x2b   : > { %v634_v21 = vadd.f32 %v602_v31, %v531_v61  ;;  %v818_v27 = vadd.f32 %v786_v22, %v718_v7  ;;  %v516_v25 = vadd.f32 %v484_v14, %v416_v0  ;;  %v687_v26 = vmul.f32 %v2328_v37, %v2294_v16 }
  0x2c   : > { %v1120_v49 = vadd.f32 %v2343_v45, %v1020_v6  ;;  %v1036_v30 = vadd.f32 %v1004_v2, %v936_v20  ;;  %v1105_v1 = vmul.f32 %v2452_v13, %v2306_v24  ;;  %v787_v39 = vmul.f32 %v2331_v38, %v2296_v17 }
  0x2d   : > { %v734_v32 = vadd.f32 %v702_v52, %v634_v21  ;;  %v921_v45 = vadd.f32 %v889_v33, %v818_v27  ;;  %v619_v22 = vadd.f32 %v587_v15, %v516_v25  ;;  %v300_v50 = vmul.f32 %v2337_v42, %v2283_v9  ;;  %v2474_v42 = vld [vmem:[%s2281_s25 + $0x49] sm:$0xff] }
  0x2e   : > { %v1158_v40 = vadd.f32 %v2444_v53, %v1120_v49  ;;  %v1136_v31 = vadd.f32 %v1104_v3, %v1036_v30  ;;  %v400_v2 = vmul.f32 %v2346_v46, %v2285_v10  ;;  %v500_v52 = vmul.f32 %v2349_v47, %v2287_v11  ;;  %v2477_v3 = vld [vmem:[%s2281_s25 + $0x4a] sm:$0xff] }
  0x2f   : > { %v834_v54 = vadd.f32 %v802_v62, %v734_v32  ;;  %v1021_v61 = vadd.f32 %v989_v41, %v921_v45  ;;  %v719_v0 = vadd.f32 %v687_v26, %v619_v22  ;;  %v890_v33 = vmul.f32 %v2464_v55, %v2298_v18 }
  0x30   : > { %v1190_v60 = vmax.f32 %v1158_v40, 0.0  ;;  %v1174_v6 = vadd.f32 %v2444_v53, %v1136_v31  ;;  %v432_v62 = vadd.f32 %v400_v2, %v300_v50  ;;  %v603_v46 = vmul.f32 %v2352_v48, %v2289_v12 }
  0x31   : > { %v937_v7 = vadd.f32 %v905_v35, %v834_v54  ;;  %v1121_v47 = vadd.f32 %v1089_v56, %v1021_v61  ;;  %v819_v41 = vadd.f32 %v787_v39, %v719_v0  ;;  %v990_v14 = vmul.f32 %v2474_v42, %v2300_v19  ;;  %v2505_v54 = vld [vmem:[%s2281_s25 + $0x109] sm:$0xff] }
  0x32   : > { %1989 = vmatprep.mubr.msk.f32.mxu0 %vm1229_vm0, %v1190_v60  ;;  %v1090_v15 = vmul.f32 %v2477_v3, %v2306_v24  ;;  %v1206_v20 = vmax.f32 %v1174_v6, 0.0  ;;  %v532_v35 = vadd.f32 %v500_v52, %v432_v62  ;;  %v703_v49 = vmul.f32 %v2365_v58, %v2294_v16 }
  0x33   : > { %v1037_v21 = vadd.f32 %v1005_v44, %v937_v7  ;;  %v1159_v27 = vadd.f32 %v2444_v53, %v1121_v47  ;;  %v922_v25 = vadd.f32 %v890_v33, %v819_v41  ;;  %v803_v56 = vmul.f32 %v2368_v59, %v2296_v17  ;;  %v2495_v44 = vld [vmem:[%s2281_s25 + $0x108] sm:$0xff]  ;;  %v2525_v47 = vld [vmem:[%s2281_s25 + $0x50] sm:$0xff] }
  0x34   : > { %v285_v26 = vmul.f32 %v2374_v63, %v2283_v9  ;;  %2013 = vmatprep.mubr.msk.f32.mxu1 %vm1229_vm0, %v1206_v20  ;;  %v635_v32 = vadd.f32 %v603_v46, %v532_v35  ;;  %v385_v39 = vmul.f32 %v2383_v4, %v2285_v10  ;;  %v485_v40 = vmul.f32 %v2386_v5, %v2287_v11  ;;  %v2528_v41 = vld [vmem:[%s2281_s25 + $0x51] sm:$0xff] }
  0x35   : > { %v1137_v30 = vadd.f32 %v1105_v1, %v1037_v21  ;;  %v1191_v45 = vmax.f32 %v1159_v27, 0.0  ;;  %v1022_v22 = vadd.f32 %v990_v14, %v922_v25  ;;  %v906_v50 = vmul.f32 %v2495_v44, %v2298_v18  ;;  %v2508_v1 = vld [vmem:[%s2281_s25 + $0x10a] sm:$0xff] }
  0x36   : > { %v735_v63 = vadd.f32 %v703_v49, %v635_v32  ;;  %v417_v2 = vadd.f32 %v385_v39, %v285_v26  ;;  %v588_v4 = vmul.f32 %v2398_v23, %v2289_v12  ;;  %v1006_v52 = vmul.f32 %v2505_v54, %v2300_v19  ;;  %v2540_v49 = vld [vmem:[%s2281_s25 + $0x52] sm:$0xff] }
  0x37   : > { %v1175_v31 = vadd.f32 %v2444_v53, %v1137_v30  ;;  %1990 = vmatmul.mubr.msk.f32.vlgmr.msra.gmra.mxu0 %vm1229_vm0, %v1191_v45  ;;  %v1122_v5 = vadd.f32 %v1090_v15, %v1022_v22  ;;  %v1106_v60 = vmul.f32 %v2508_v1, %v2306_v24  ;;  %v688_v61 = vmul.f32 %v2408_v34, %v2294_v16  ;;  %v2554_v45 = vld [vmem:[%s2281_s25 + $0x110] sm:$0xff] }
  0x38   : > { %v835_v33 = vadd.f32 %v803_v56, %v735_v63  ;;  %v517_v6 = vadd.f32 %v485_v40, %v417_v2  ;;  %v301_v7 = vmul.f32 %v2403_v29, %v2283_v9  ;;  %v788_v46 = vmul.f32 %v2414_v43, %v2296_v17  ;;  %v2557_v22 = vld [vmem:[%s2281_s25 + $0x111] sm:$0xff] }
  0x39   : > { %v1207_v0 = vmax.f32 %v1175_v31, 0.0  ;;  %v1160_v62 = vadd.f32 %v2444_v53, %v1122_v5  ;;  %v401_v14 = vmul.f32 %v2419_v51, %v2285_v10  ;;  %v501_v15 = vmul.f32 %v2426_v57, %v2287_v11  ;;  %v2568_v5 = vld [vmem:[%s2281_s25 + $0x112] sm:$0xff] }
  0x3a   : > { %v938_v20 = vadd.f32 %v906_v50, %v835_v33  ;;  %v620_v29 = vadd.f32 %v588_v4, %v517_v6  ;;  %v891_v21 = vmul.f32 %v2525_v47, %v2298_v18  ;;  %v991_v35 = vmul.f32 %v2528_v41, %v2300_v19 }
  0x3b   : > { %2014 = vmatmul.mubr.msk.f32.vlgmr.msra.gmra.mxu1 %vm1229_vm0, %v1207_v0  ;;  %v1192_v27 = vmax.f32 %v1160_v62, 0.0  ;;  %v1091_v51 = vmul.f32 %v2540_v49, %v2306_v24  ;;  %v433_v25 = vadd.f32 %v401_v14, %v301_v7  ;;  %v604_v57 = vmul.f32 %v2432_v36, %v2289_v12 }
  0x3c   : > { %v1038_v56 = vadd.f32 %v1006_v52, %v938_v20  ;;  %v720_v26 = vadd.f32 %v688_v61, %v620_v29  ;;  %v704_v30 = vmul.f32 %v2435_v8, %v2294_v16  ;;  %v286_v32 = vmul.f32 %v2314_v28, %v2283_v9 }
  0x3d   : > { %1992 = vmatprep.mubr.msk.f32.mxu0 %vm1229_vm0, %v1192_v27  ;;  %v533_v39 = vadd.f32 %v501_v15, %v433_v25  ;;  %v804_v40 = vmul.f32 %v2452_v13, %v2296_v17  ;;  %v386_v50 = vmul.f32 %v2328_v37, %v2285_v10  ;;  %v486_v31 = vmul.f32 %v2331_v38, %v2287_v11 }
  0x3e   : > { %v1138_v63 = vadd.f32 %v1106_v60, %v1038_v56  ;;  %v820_v2 = vadd.f32 %v788_v46, %v720_v26  ;;  %v907_v28 = vmul.f32 %v2554_v45, %v2298_v18  ;;  %v1007_v4 = vmul.f32 %v2557_v22, %v2300_v19  ;;  %v2580_v46 = vld [vmem:[%s2281_s25 + $0x60] sm:$0xff] }
  0x3f   : > { %v636_v52 = vadd.f32 %v604_v57, %v533_v39  ;;  %v1107_v61 = vmul.f32 %v2568_v5, %v2306_v24  ;;  %v418_v0 = vadd.f32 %v386_v50, %v286_v32  ;;  %v589_v37 = vmul.f32 %v2464_v55, %v2289_v12  ;;  %v2591_v57 = vld [vmem:[%s2281_s25 + $0x61] sm:$0xff] }
  0x40   : > { %v1176_v38 = vadd.f32 %v2444_v53, %v1138_v63  ;;  %v923_v60 = vadd.f32 %v891_v21, %v820_v2  ;;  %v689_v33 = vmul.f32 %v2474_v42, %v2294_v16  ;;  %v302_v6 = vmul.f32 %v2352_v48, %v2283_v9  ;;  %v2594_v56 = vld [vmem:[%s2281_s25 + $0x62] sm:$0xff] }
  0x41   : > { %v736_v7 = vadd.f32 %v704_v30, %v636_v52  ;;  %v518_v62 = vadd.f32 %v486_v31, %v418_v0  ;;  %v402_v14 = vmul.f32 %v2365_v58, %v2285_v10  ;;  %v502_v15 = vmul.f32 %v2368_v59, %v2287_v11  ;;  %v2611_v2 = vld [vmem:[%s2281_s25 + $0x120] sm:$0xff] }
  0x42   : > { %v1208_v20 = vmax.f32 %v1176_v38, 0.0  ;;  %v1023_v29 = vadd.f32 %v991_v35, %v923_v60  ;;  %v789_v21 = vmul.f32 %v2477_v3, %v2296_v17  ;;  %v892_v27 = vmul.f32 %v2580_v46, %v2298_v18 }
  0x43   : > { %v836_v25 = vadd.f32 %v804_v40, %v736_v7  ;;  %v621_v48 = vadd.f32 %v589_v37, %v518_v62  ;;  %v434_v26 = vadd.f32 %v402_v14, %v302_v6  ;;  %v605_v58 = vmul.f32 %v2495_v44, %v2289_v12  ;;  %v2625_v7 = vld [vmem:[%s2281_s25 + $0x122] sm:$0xff] }
  0x44   : > { %2016 = vmatprep.mubr.msk.f32.mxu1 %vm1229_vm0, %v1208_v20  ;;  %v1123_v59 = vadd.f32 %v1091_v51, %v1023_v29  ;;  %v992_v35 = vmul.f32 %v2591_v57, %v2300_v19  ;;  %v1092_v30 = vmul.f32 %v2594_v56, %v2306_v24  ;;  %v705_v32 = vmul.f32 %v2505_v54, %v2294_v16 }
  0x45   : > { %v939_v39 = vadd.f32 %v907_v28, %v836_v25  ;;  %v721_v40 = vadd.f32 %v689_v33, %v621_v48  ;;  %v534_v50 = vadd.f32 %v502_v15, %v434_v26  ;;  %v287_v31 = vmul.f32 %v2398_v23, %v2283_v9  ;;  %v2620_v23 = vld [vmem:[%s2281_s25 + $0x121] sm:$0xff] }
  0x46   : > { %v1161_v63 = vadd.f32 %v2444_v53, %v1123_v59  ;;  %v805_v51 = vmul.f32 %v2508_v1, %v2296_v17  ;;  %v387_v52 = vmul.f32 %v2408_v34, %v2285_v10  ;;  %v487_v0 = vmul.f32 %v2414_v43, %v2287_v11 }
  0x47   : > { %v1039_v28 = vadd.f32 %v1007_v4, %v939_v39  ;;  %v821_v37 = vadd.f32 %v789_v21, %v721_v40  ;;  %v637_v38 = vadd.f32 %v605_v58, %v534_v50  ;;  %v908_v60 = vmul.f32 %v2611_v2, %v2298_v18 }
  0x48   : > { %v1193_v33 = vmax.f32 %v1161_v63, 0.0  ;;  %v1008_v6 = vmul.f32 %v2620_v23, %v2300_v19  ;;  %v419_v62 = vadd.f32 %v387_v52, %v287_v31  ;;  %v590_v34 = vmul.f32 %v2525_v47, %v2289_v12  ;;  %v2651_v31 = vld [vmem:[%s2281_s25 + $0x69] sm:$0xff] }
  0x49   : > { %v1139_v43 = vadd.f32 %v1107_v61, %v1039_v28  ;;  %v924_v4 = vadd.f32 %v892_v27, %v821_v37  ;;  %v737_v14 = vadd.f32 %v705_v32, %v637_v38  ;;  %v1108_v15 = vmul.f32 %v2625_v7, %v2306_v24  ;;  %v2644_v32 = vld [vmem:[%s2281_s25 + $0x68] sm:$0xff] }
  0x4a   : > { %1993 = vmatmul.mubr.msk.f32.gmra.mxu0 %vm1229_vm0, %v1193_v33  ;;  %v519_v20 = vadd.f32 %v487_v0, %v419_v62  ;;  %v690_v29 = vmul.f32 %v2528_v41, %v2294_v16  ;;  %v303_v21 = vmul.f32 %v2432_v36, %v2283_v9  ;;  %v403_v25 = vmul.f32 %v2435_v8, %v2285_v10  ;;  %v2667_v62 = vld [vmem:[%s2281_s25 + $0x128] sm:$0xff] }
  0x4b   : > { %v1177_v61 = vadd.f32 %v2444_v53, %v1139_v43  ;;  %v1024_v27 = vadd.f32 %v992_v35, %v924_v4  ;;  %v837_v48 = vadd.f32 %v805_v51, %v737_v14  ;;  %v503_v26 = vmul.f32 %v2452_v13, %v2287_v11 }
  0x4c   : > { %v622_v58 = vadd.f32 %v590_v34, %v519_v20  ;;  %v790_v59 = vmul.f32 %v2540_v49, %v2296_v17  ;;  %v435_v39 = vadd.f32 %v403_v25, %v303_v21  ;;  %v606_v36 = vmul.f32 %v2554_v45, %v2289_v12  ;;  %v2678_v21 = vld [vmem:[%s2281_s25 + $0x129] sm:$0xff] }
  0x4d   : > { %v1209_v40 = vmax.f32 %v1177_v61, 0.0  ;;  %v1124_v8 = vadd.f32 %v1092_v30, %v1024_v27  ;;  %v940_v50 = vadd.f32 %v908_v60, %v837_v48  ;;  %v893_v35 = vmul.f32 %v2644_v32, %v2298_v18  ;;  %v2664_v60 = vld [vmem:[%s2281_s25 + $0x6a] sm:$0xff] }
  0x4e   : > { %v722_v13 = vadd.f32 %v690_v29, %v622_v58  ;;  %v993_v63 = vmul.f32 %v2651_v31, %v2300_v19  ;;  %v535_v51 = vadd.f32 %v503_v26, %v435_v39  ;;  %v706_v52 = vmul.f32 %v2557_v22, %v2294_v16  ;;  %v2681_v25 = vld [vmem:[%s2281_s25 + $0x12a] sm:$0xff] }
  0x4f   : > { %2017 = vmatmul.mubr.msk.f32.gmra.mxu1 %vm1229_vm0, %v1209_v40  ;;  %v1162_v0 = vadd.f32 %v2444_v53, %v1124_v8  ;;  %v1040_v30 = vadd.f32 %v1008_v6, %v940_v50  ;;  %v806_v28 = vmul.f32 %v2568_v5, %v2296_v17  ;;  %v288_v37 = vmul.f32 %v2464_v55, %v2283_v9  ;;  %v2698_v8 = vld [vmem:[%s2281_s25 + $0x78] sm:$0xff] }
  0x50   : > { %v822_v38 = vadd.f32 %v790_v59, %v722_v13  ;;  %v638_v33 = vadd.f32 %v606_v36, %v535_v51  ;;  %v388_v34 = vmul.f32 %v2474_v42, %v2285_v10  ;;  %v488_v43 = vmul.f32 %v2477_v3, %v2287_v11 }
  0x51   : > { %v1194_v6 = vmax.f32 %v1162_v0, 0.0  ;;  %v1140_v4 = vadd.f32 %v1108_v15, %v1040_v30  ;;  %v1093_v14 = vmul.f32 %v2664_v60, %v2306_v24  ;;  %v909_v55 = vmul.f32 %v2667_v62, %v2298_v18  ;;  %v2707_v0 = vld [vmem:[%s2281_s25 + $0x79] sm:$0xff] }
  0x52   : > { %v925_v20 = vadd.f32 %v893_v35, %v822_v38  ;;  %v738_v29 = vadd.f32 %v706_v52, %v638_v33  ;;  %v420_v61 = vadd.f32 %v388_v34, %v288_v37  ;;  %v591_v42 = vmul.f32 %v2580_v46, %v2289_v12 }
  0x53   : > { %1995 = vmatprep.mubr.msk.f32.mxu0 %vm1229_vm0, %v1194_v6  ;;  %v1178_v3 = vadd.f32 %v2444_v53, %v1140_v4  ;;  %v1009_v15 = vmul.f32 %v2678_v21, %v2300_v19  ;;  %v1109_v27 = vmul.f32 %v2681_v25, %v2306_v24  ;;  %v691_v48 = vmul.f32 %v2591_v57, %v2294_v16 }
  0x54   : > { %v1025_v26 = vadd.f32 %v993_v63, %v925_v20  ;;  %v838_v58 = vadd.f32 %v806_v28, %v738_v29  ;;  %v520_v59 = vadd.f32 %v488_v43, %v420_v61  ;;  %v304_v39 = vmul.f32 %v2495_v44, %v2283_v9  ;;  %v2710_v44 = vld [vmem:[%s2281_s25 + $0x7a] sm:$0xff] }
  0x55   : > { %v1210_v36 = vmax.f32 %v1178_v3, 0.0  ;;  %v791_v40 = vmul.f32 %v2594_v56, %v2296_v17  ;;  %v404_v50 = vmul.f32 %v2505_v54, %v2285_v10  ;;  %v504_v35 = vmul.f32 %v2508_v1, %v2287_v11 }
  0x56   : > { %v1125_v13 = vadd.f32 %v1093_v14, %v1025_v26  ;;  %v941_v51 = vadd.f32 %v909_v55, %v838_v58  ;;  %v623_v63 = vadd.f32 %v591_v42, %v520_v59  ;;  %v894_v52 = vmul.f32 %v2698_v8, %v2298_v18  ;;  %v2731_v42 = vld [vmem:[%s2281_s25 + $0x138] sm:$0xff] }
  0x57   : > { %2019 = vmatprep.mubr.msk.f32.mxu1 %vm1229_vm0, %v1210_v36  ;;  %v994_v30 = vmul.f32 %v2707_v0, %v2300_v19  ;;  %v1094_v54 = vmul.f32 %v2710_v44, %v2306_v24  ;;  %v436_v1 = vadd.f32 %v404_v50, %v304_v39  ;;  %v607_v28 = vmul.f32 %v2611_v2, %v2289_v12 }
  0x58   : > { %v1163_v37 = vadd.f32 %v2444_v53, %v1125_v13  ;;  %v1041_v38 = vadd.f32 %v1009_v15, %v941_v51  ;;  %v723_v33 = vadd.f32 %v691_v48, %v623_v63  ;;  %v707_v34 = vmul.f32 %v2620_v23, %v2294_v16  ;;  %v2739_v48 = vld [vmem:[%s2281_s25 + $0x13a] sm:$0xff] }
  0x59   : > { %v536_v43 = vadd.f32 %v504_v35, %v436_v1  ;;  %v289_v6 = vmul.f32 %v2525_v47, %v2283_v9  ;;  %v389_v4 = vmul.f32 %v2528_v41, %v2285_v10  ;;  %v489_v14 = vmul.f32 %v2540_v49, %v2287_v11  ;;  %v2736_v47 = vld [vmem:[%s2281_s25 + $0x139] sm:$0xff] }
  0x5a   : > { %v1195_v55 = vmax.f32 %v1163_v37, 0.0  ;;  %v1141_v20 = vadd.f32 %v1109_v27, %v1041_v38  ;;  %v823_v29 = vadd.f32 %v791_v40, %v723_v33  ;;  %v807_v61 = vmul.f32 %v2625_v7, %v2296_v17  ;;  %v2754_v51 = vld [vmem:[%s2281_s25 + $0x80] sm:$0xff] }
  0x5b   : > { %v639_v3 = vadd.f32 %v607_v28, %v536_v43  ;;  %v910_v15 = vmul.f32 %v2731_v42, %v2298_v18  ;;  %v421_v41 = vadd.f32 %v389_v4, %v289_v6  ;;  %v592_v49 = vmul.f32 %v2644_v32, %v2289_v12  ;;  %v2765_v33 = vld [vmem:[%s2281_s25 + $0x81] sm:$0xff] }
  0x5c   : > { %1996 = vmatmul.mubr.msk.f32.gmra.mxu0 %vm1229_vm0, %v1195_v55  ;;  %v1179_v27 = vadd.f32 %v2444_v53, %v1141_v20  ;;  %v926_v26 = vadd.f32 %v894_v52, %v823_v29  ;;  %v1010_v58 = vmul.f32 %v2736_v47, %v2300_v19  ;;  %v1110_v59 = vmul.f32 %v2739_v48, %v2306_v24 }
  0x5d   : > { %v739_v39 = vadd.f32 %v707_v34, %v639_v3  ;;  %v521_v36 = vadd.f32 %v489_v14, %v421_v41  ;;  %v692_v40 = vmul.f32 %v2651_v31, %v2294_v16  ;;  %v305_v50 = vmul.f32 %v2554_v45, %v2283_v9 }
  0x5e   : > { %v1211_v35 = vmax.f32 %v1179_v27, 0.0  ;;  %v1026_v13 = vadd.f32 %v994_v30, %v926_v26  ;;  %v405_v63 = vmul.f32 %v2557_v22, %v2285_v10  ;;  %v505_v52 = vmul.f32 %v2568_v5, %v2287_v11  ;;  %v2771_v22 = vld [vmem:[%s2281_s25 + $0x82] sm:$0xff] }
  0x5f   : > { %v839_v1 = vadd.f32 %v807_v61, %v739_v39  ;;  %v624_v28 = vadd.f32 %v592_v49, %v521_v36  ;;  %v792_v37 = vmul.f32 %v2664_v60, %v2296_v17  ;;  %v895_v38 = vmul.f32 %v2754_v51, %v2298_v18  ;;  %v2789_v26 = vld [vmem:[%s2281_s25 + $0x140] sm:$0xff] }
  0x60   : > { %2020 = vmatmul.mubr.msk.f32.gmra.mxu1 %vm1229_vm0, %v1211_v35  ;;  %v1126_v45 = vadd.f32 %v1094_v54, %v1026_v13  ;;  %v995_v30 = vmul.f32 %v2765_v33, %v2300_v19  ;;  %v437_v34 = vadd.f32 %v405_v63, %v305_v50  ;;  %v608_v5 = vmul.f32 %v2667_v62, %v2289_v12  ;;  %v2792_v39 = vld [vmem:[%s2281_s25 + $0x141] sm:$0xff] }
  0x61   : > { %v942_v43 = vadd.f32 %v910_v15, %v839_v1  ;;  %v724_v6 = vadd.f32 %v692_v40, %v624_v28  ;;  %v1095_v4 = vmul.f32 %v2771_v22, %v2306_v24  ;;  %v708_v14 = vmul.f32 %v2678_v21, %v2294_v16  ;;  %v2801_v35 = vld [vmem:[%s2281_s25 + $0x142] sm:$0xff] }
  0x62   : > { %v1164_v54 = vadd.f32 %v2444_v53, %v1126_v45  ;;  %v537_v55 = vadd.f32 %v505_v52, %v437_v34  ;;  %v290_v20 = vmul.f32 %v2580_v46, %v2283_v9  ;;  %v390_v29 = vmul.f32 %v2591_v57, %v2285_v10 }
  0x63   : > { %v1042_v61 = vadd.f32 %v1010_v58, %v942_v43  ;;  %v824_v3 = vadd.f32 %v792_v37, %v724_v6  ;;  %v808_v15 = vmul.f32 %v2681_v25, %v2296_v17  ;;  %v490_v41 = vmul.f32 %v2594_v56, %v2287_v11 }
  0x64   : > { %v1196_v49 = vmax.f32 %v1164_v54, 0.0  ;;  %v640_v27 = vadd.f32 %v608_v5, %v537_v55  ;;  %v422_v36 = vadd.f32 %v390_v29, %v290_v20  ;;  %v593_v46 = vmul.f32 %v2698_v8, %v2289_v12 }
  0x65   : > { %v1142_v40 = vadd.f32 %v1110_v59, %v1042_v61  ;;  %v927_v57 = vadd.f32 %v895_v38, %v824_v3  ;;  %v911_v58 = vmul.f32 %v2789_v26, %v2298_v18  ;;  %v1011_v50 = vmul.f32 %v2792_v39, %v2300_v19  ;;  %v2830_v61 = vld [vmem:[%s2281_s25 + $0x92] sm:$0xff] }
  0x66   : > { %1998 = vmatprep.mubr.msk.f32.mxu0 %vm1229_vm0, %v1196_v49  ;;  %v740_v56 = vadd.f32 %v708_v14, %v640_v27  ;;  %v1111_v13 = vmul.f32 %v2801_v35, %v2306_v24  ;;  %v522_v63 = vadd.f32 %v490_v41, %v422_v36  ;;  %v693_v59 = vmul.f32 %v2707_v0, %v2294_v16  ;;  %v2818_v14 = vld [vmem:[%s2281_s25 + $0x90] sm:$0xff] }
  0x67   : > { %v1180_v52 = vadd.f32 %v2444_v53, %v1142_v40  ;;  %v1027_v1 = vadd.f32 %v995_v30, %v927_v57  ;;  %v306_v28 = vmul.f32 %v2611_v2, %v2283_v9  ;;  %v406_v37 = vmul.f32 %v2620_v23, %v2285_v10  ;;  %v2821_v30 = vld [vmem:[%s2281_s25 + $0x91] sm:$0xff] }
  0x68   : > { %v840_v38 = vadd.f32 %v808_v15, %v740_v56  ;;  %v625_v45 = vadd.f32 %v593_v46, %v522_v63  ;;  %v793_v34 = vmul.f32 %v2710_v44, %v2296_v17  ;;  %v506_v5 = vmul.f32 %v2625_v7, %v2287_v11 }
  0x69   : > { %v1212_v43 = vmax.f32 %v1180_v52, 0.0  ;;  %v1127_v6 = vadd.f32 %v1095_v4, %v1027_v1  ;;  %v438_v54 = vadd.f32 %v406_v37, %v306_v28  ;;  %v609_v2 = vmul.f32 %v2731_v42, %v2289_v12 }
  0x6a   : > { %v943_v55 = vadd.f32 %v911_v58, %v840_v38  ;;  %v725_v23 = vadd.f32 %v693_v59, %v625_v45  ;;  %v896_v20 = vmul.f32 %v2818_v14, %v2298_v18  ;;  %v996_v29 = vmul.f32 %v2821_v30, %v2300_v19  ;;  %v2847_v59 = vld [vmem:[%s2281_s25 + $0x150] sm:$0xff] }
  0x6b   : > { %2022 = vmatprep.mubr.msk.f32.mxu1 %vm1229_vm0, %v1212_v43  ;;  %v1165_v7 = vadd.f32 %v2444_v53, %v1127_v6  ;;  %v1096_v4 = vmul.f32 %v2830_v61, %v2306_v24  ;;  %v538_v3 = vadd.f32 %v506_v5, %v438_v54  ;;  %v709_v15 = vmul.f32 %v2736_v47, %v2294_v16 }
  0x6c   : > { %v1043_v41 = vadd.f32 %v1011_v50, %v943_v55  ;;  %v825_v49 = vadd.f32 %v793_v34, %v725_v23  ;;  %v291_v27 = vmul.f32 %v2644_v32, %v2283_v9  ;;  %v391_v36 = vmul.f32 %v2651_v31, %v2285_v10  ;;  %v2850_v50 = vld [vmem:[%s2281_s25 + $0x151] sm:$0xff] }
  0x6d   : > { %v1197_v46 = vmax.f32 %v1165_v7, 0.0  ;;  %v641_v40 = vadd.f32 %v609_v2, %v538_v3  ;;  %v809_v57 = vmul.f32 %v2739_v48, %v2296_v17  ;;  %v491_v58 = vmul.f32 %v2664_v60, %v2287_v11  ;;  %v2869_v2 = vld [vmem:[%s2281_s25 + $0x152] sm:$0xff] }
  0x6e   : > { %v1143_v56 = vadd.f32 %v1111_v13, %v1043_v41  ;;  %v928_v63 = vadd.f32 %v896_v20, %v825_v49  ;;  %v423_v52 = vadd.f32 %v391_v36, %v291_v27  ;;  %v594_v32 = vmul.f32 %v2754_v51, %v2289_v12  ;;  %v2879_v7 = vld [vmem:[%s2281_s25 + $0x99] sm:$0xff] }
  0x6f   : > { %1999 = vmatmul.mubr.msk.f32.gmra.mxu0 %vm1229_vm0, %v1197_v46  ;;  %v741_v31 = vadd.f32 %v709_v15, %v641_v40  ;;  %v912_v1 = vmul.f32 %v2847_v59, %v2298_v18  ;;  %v1012_v60 = vmul.f32 %v2850_v50, %v2300_v19  ;;  %v694_v38 = vmul.f32 %v2765_v33, %v2294_v16 }
  0x70   : > { %v1181_v13 = vadd.f32 %v2444_v53, %v1143_v56  ;;  %v1028_v28 = vadd.f32 %v996_v29, %v928_v63  ;;  %v523_v37 = vadd.f32 %v491_v58, %v423_v52  ;;  %v307_v34 = vmul.f32 %v2667_v62, %v2283_v9  ;;  %v2876_v62 = vld [vmem:[%s2281_s25 + $0x98] sm:$0xff] }
  0x71   : > { %v841_v45 = vadd.f32 %v809_v57, %v741_v31  ;;  %v407_v5 = vmul.f32 %v2678_v21, %v2285_v10  ;;  %v507_v43 = vmul.f32 %v2681_v25, %v2287_v11  ;;  %v794_v23 = vmul.f32 %v2771_v22, %v2296_v17  ;;  %v2894_v58 = vld [vmem:[%s2281_s25 + $0x9a] sm:$0xff] }
  0x72   : > { %v1213_v6 = vmax.f32 %v1181_v13, 0.0  ;;  %v1128_v54 = vadd.f32 %v1096_v4, %v1028_v28  ;;  %v626_v55 = vadd.f32 %v594_v32, %v523_v37  ;;  %v1112_v29 = vmul.f32 %v2869_v2, %v2306_v24 }
  0x73   : > { %v944_v20 = vadd.f32 %v912_v1, %v841_v45  ;;  %v439_v21 = vadd.f32 %v407_v5, %v307_v34  ;;  %v610_v25 = vmul.f32 %v2789_v26, %v2289_v12  ;;  %v897_v15 = vmul.f32 %v2876_v62, %v2298_v18 }
  0x74   : > { %2023 = vmatmul.mubr.msk.f32.gmra.mxu1 %vm1229_vm0, %v1213_v6  ;;  %v1166_v4 = vadd.f32 %v2444_v53, %v1128_v54  ;;  %v726_v3 = vadd.f32 %v694_v38, %v626_v55  ;;  %v997_v41 = vmul.f32 %v2879_v7, %v2300_v19  ;;  %v710_v36 = vmul.f32 %v2792_v39, %v2294_v16 }
  0x75   : > { %v1044_v49 = vadd.f32 %v1012_v60, %v944_v20  ;;  %v539_v27 = vadd.f32 %v507_v43, %v439_v21  ;;  %v292_v46 = vmul.f32 %v2698_v8, %v2283_v9  ;;  %v392_v56 = vmul.f32 %v2707_v0, %v2285_v10  ;;  %v2905_v60 = vld [vmem:[%s2281_s25 + $0x158] sm:$0xff] }
  0x76   : > { %v1198_v40 = vmax.f32 %v1166_v4, 0.0  ;;  %v826_v57 = vadd.f32 %v794_v23, %v726_v3  ;;  %v492_v63 = vmul.f32 %v2710_v44, %v2287_v11  ;;  %v1097_v32 = vmul.f32 %v2894_v58, %v2306_v24  ;;  %v2911_v0 = vld [vmem:[%s2281_s25 + $0x159] sm:$0xff]  ;;  %v2932_v3 = vld [vmem:[%s2281_s25 + $0xa8] sm:$0xff] }
  0x77   : > { %v1144_v52 = vadd.f32 %v1112_v29, %v1044_v49  ;;  %v642_v31 = vadd.f32 %v610_v25, %v539_v27  ;;  %v810_v1 = vmul.f32 %v2801_v35, %v2296_v17  ;;  %v913_v13 = vmul.f32 %v2905_v60, %v2298_v18  ;;  %v2929_v25 = vld [vmem:[%s2281_s25 + $0x15a] sm:$0xff] }
  0x78   : > { %2001 = vmatprep.mubr.msk.f32.mxu0 %vm1229_vm0, %v1198_v40  ;;  %v929_v8 = vadd.f32 %v897_v15, %v826_v57  ;;  %v424_v44 = vadd.f32 %v392_v56, %v292_v46  ;;  %v595_v28 = vmul.f32 %v2818_v14, %v2289_v12  ;;  %v1013_v45 = vmul.f32 %v2911_v0, %v2300_v19  ;;  %v2935_v15 = vld [vmem:[%s2281_s25 + $0xa9] sm:$0xff] }
  0x79   : > { %v1182_v37 = vadd.f32 %v2444_v53, %v1144_v52  ;;  %v742_v38 = vadd.f32 %v710_v36, %v642_v31  ;;  %v695_v34 = vmul.f32 %v2821_v30, %v2294_v16  ;;  %v308_v6 = vmul.f32 %v2731_v42, %v2283_v9 }
  0x7a   : > { %v1029_v5 = vadd.f32 %v997_v41, %v929_v8  ;;  %v524_v43 = vadd.f32 %v492_v63, %v424_v44  ;;  %v408_v54 = vmul.f32 %v2736_v47, %v2285_v10  ;;  %v795_v20 = vmul.f32 %v2830_v61, %v2296_v17  ;;  %v2956_v8 = vld [vmem:[%s2281_s25 + $0xaa] sm:$0xff] }
  0x7b   : > { %v1214_v55 = vmax.f32 %v1182_v37, 0.0  ;;  %v842_v23 = vadd.f32 %v810_v1, %v742_v38  ;;  %v508_v29 = vmul.f32 %v2739_v48, %v2287_v11  ;;  %v611_v47 = vmul.f32 %v2847_v59, %v2289_v12  ;;  %v2966_v38 = vld [vmem:[%s2281_s25 + $0x169] sm:$0xff] }
  0x7c   : > { %v1129_v21 = vadd.f32 %v1097_v32, %v1029_v5  ;;  %v627_v4 = vadd.f32 %v595_v28, %v524_v43  ;;  %v440_v42 = vadd.f32 %v408_v54, %v308_v6  ;;  %v1113_v49 = vmul.f32 %v2929_v25, %v2306_v24 }
  0x7d   : > { %2025 = vmatprep.mubr.msk.f32.mxu1 %vm1229_vm0, %v1214_v55  ;;  %v945_v41 = vadd.f32 %v913_v13, %v842_v23  ;;  %v898_v48 = vmul.f32 %v2932_v3, %v2298_v18  ;;  %v998_v27 = vmul.f32 %v2935_v15, %v2300_v19  ;;  %v711_v57 = vmul.f32 %v2850_v50, %v2294_v16 }
  0x7e   : > { %v1167_v36 = vadd.f32 %v2444_v53, %v1129_v21  ;;  %v727_v46 = vadd.f32 %v695_v34, %v627_v4  ;;  %v540_v40 = vadd.f32 %v508_v29, %v440_v42  ;;  %v293_v63 = vmul.f32 %v2754_v51, %v2283_v9  ;;  %v2963_v51 = vld [vmem:[%s2281_s25 + $0x168] sm:$0xff] }
  0x7f   : > { %v1045_v56 = vadd.f32 %v1013_v45, %v945_v41  ;;  %v393_v52 = vmul.f32 %v2765_v33, %v2285_v10  ;;  %v493_v32 = vmul.f32 %v2771_v22, %v2287_v11  ;;  %v811_v44 = vmul.f32 %v2869_v2, %v2296_v17  ;;  %v2981_v21 = vld [vmem:[%s2281_s25 + $0x16a] sm:$0xff] }
  0x80   : > { %v1199_v31 = vmax.f32 %v1167_v36, 0.0  ;;  %v827_v1 = vadd.f32 %v795_v20, %v727_v46  ;;  %v643_v13 = vadd.f32 %v611_v47, %v540_v40  ;;  %v1098_v37 = vmul.f32 %v2956_v8, %v2306_v24  ;;  %v2992_v36 = vld [vmem:[%s2281_s25 + $0xb0] sm:$0xff] }
  0x81   : > { %v1145_v28 = vadd.f32 %v1113_v49, %v1045_v56  ;;  %v425_v33 = vadd.f32 %v393_v52, %v293_v63  ;;  %v596_v22 = vmul.f32 %v2876_v62, %v2289_v12  ;;  %v914_v5 = vmul.f32 %v2963_v51, %v2298_v18  ;;  %v2995_v46 = vld [vmem:[%s2281_s25 + $0xb1] sm:$0xff] }
  0x82   : > { %2002 = vmatmul.mubr.msk.f32.gmra.mxu0 %vm1229_vm0, %v1199_v31  ;;  %v930_v45 = vadd.f32 %v898_v48, %v827_v1  ;;  %v743_v34 = vadd.f32 %v711_v57, %v643_v13  ;;  %v1014_v43 = vmul.f32 %v2966_v38, %v2300_v19  ;;  %v696_v55 = vmul.f32 %v2879_v7, %v2294_v16  ;;  %v3008_v31 = vld [vmem:[%s2281_s25 + $0xb2] sm:$0xff] }
  0x83   : > { %v1183_v6 = vadd.f32 %v2444_v53, %v1145_v28  ;;  %v525_v54 = vadd.f32 %v493_v32, %v425_v33  ;;  %v309_v23 = vmul.f32 %v2789_v26, %v2283_v9  ;;  %v409_v4 = vmul.f32 %v2792_v39, %v2285_v10 }
  0x84   : > { %v1030_v20 = vadd.f32 %v998_v27, %v930_v45  ;;  %v843_v29 = vadd.f32 %v811_v44, %v743_v34  ;;  %v509_v42 = vmul.f32 %v2801_v35, %v2287_v11  ;;  %v1114_v41 = vmul.f32 %v2981_v21, %v2306_v24 }
  0x85   : > { %v1215_v47 = vmax.f32 %v1183_v6, 0.0  ;;  %v628_v49 = vadd.f32 %v596_v22, %v525_v54  ;;  %v796_v48 = vmul.f32 %v2894_v58, %v2296_v17  ;;  %v441_v40 = vadd.f32 %v409_v4, %v309_v23  ;;  %v3026_v54 = vld [vmem:[%s2281_s25 + $0x171] sm:$0xff] }
  0x86   : > { %v1130_v26 = vadd.f32 %v1098_v37, %v1030_v20  ;;  %v946_v27 = vadd.f32 %v914_v5, %v843_v29  ;;  %v612_v39 = vmul.f32 %v2905_v60, %v2289_v12  ;;  %v899_v57 = vmul.f32 %v2992_v36, %v2298_v18 }
  0x87   : > { %2026 = vmatmul.mubr.msk.f32.gmra.mxu1 %vm1229_vm0, %v1215_v47  ;;  %v728_v35 = vadd.f32 %v696_v55, %v628_v49  ;;  %v999_v56 = vmul.f32 %v2995_v46, %v2300_v19  ;;  %v712_v63 = vmul.f32 %v2911_v0, %v2294_v16  ;;  %v541_v1 = vadd.f32 %v509_v42, %v441_v40 }
  0x88   : > { %v1168_v52 = vadd.f32 %v2444_v53, %v1130_v26  ;;  %v1046_v32 = vadd.f32 %v1014_v43, %v946_v27  ;;  %v294_v13 = vmul.f32 %v2818_v14, %v2283_v9  ;;  %v1099_v28 = vmul.f32 %v3008_v31, %v2306_v24  ;;  %v3021_v43 = vld [vmem:[%s2281_s25 + $0x170] sm:$0xff] }
  0x89   : > { %v828_v44 = vadd.f32 %v796_v48, %v728_v35  ;;  %v394_v37 = vmul.f32 %v2821_v30, %v2285_v10  ;;  %v494_v33 = vmul.f32 %v2830_v61, %v2287_v11  ;;  %v644_v34 = vadd.f32 %v612_v39, %v541_v1  ;;  %v3045_v39 = vld [vmem:[%s2281_s25 + $0x172] sm:$0xff] }
  0x8a   : > { %v1200_v22 = vmax.f32 %v1168_v52, 0.0  ;;  %v1146_v45 = vadd.f32 %v1114_v41, %v1046_v32  ;;  %v812_v5 = vmul.f32 %v2929_v25, %v2296_v17  ;;  %v915_v14 = vmul.f32 %v3021_v43, %v2298_v18 }
  0x8b   : > { %v931_v6 = vadd.f32 %v899_v57, %v828_v44  ;;  %v426_v55 = vadd.f32 %v394_v37, %v294_v13  ;;  %v597_v30 = vmul.f32 %v2932_v3, %v2289_v12  ;;  %v744_v23 = vadd.f32 %v712_v63, %v644_v34  ;;  %v3048_v57 = vld [vmem:[%s2281_s25 + $0xc0] sm:$0xff] }
  0x8c   : > { %2004 = vmatprep.mubr.msk.f32.mxu0 %vm1229_vm0, %v1200_v22  ;;  %v1184_v61 = vadd.f32 %v2444_v53, %v1146_v45  ;;  %v1015_v20 = vmul.f32 %v3026_v54, %v2300_v19  ;;  %v697_v29 = vmul.f32 %v2935_v15, %v2294_v16  ;;  %v310_v47 = vmul.f32 %v2847_v59, %v2283_v9 }
  0x8d   : > { %v1031_v4 = vadd.f32 %v999_v56, %v931_v6  ;;  %v526_v42 = vadd.f32 %v494_v33, %v426_v55  ;;  %v410_v41 = vmul.f32 %v2850_v50, %v2285_v10  ;;  %v844_v48 = vadd.f32 %v812_v5, %v744_v23  ;;  %v3051_v56 = vld [vmem:[%s2281_s25 + $0xc1] sm:$0xff] }
  0x8e   : > { %v1216_v49 = vmax.f32 %v1184_v61, 0.0  ;;  %v797_v26 = vmul.f32 %v2956_v8, %v2296_v17  ;;  %v510_v27 = vmul.f32 %v2869_v2, %v2287_v11  ;;  %v613_v50 = vmul.f32 %v2963_v51, %v2289_v12  ;;  %v3072_v6 = vld [vmem:[%s2281_s25 + $0xc2] sm:$0xff] }
  0x8f   : > { %v1131_v40 = vadd.f32 %v1099_v28, %v1031_v4  ;;  %v629_v35 = vadd.f32 %v597_v30, %v526_v42  ;;  %v442_v59 = vadd.f32 %v410_v41, %v310_v47  ;;  %v947_v63 = vadd.f32 %v915_v14, %v844_v48  ;;  %v3079_v61 = vld [vmem:[%s2281_s25 + $0x180] sm:$0xff] }
  0x90   : > { %2028 = vmatprep.mubr.msk.f32.mxu1 %vm1229_vm0, %v1216_v49  ;;  %v1115_v52 = vmul.f32 %v3045_v39, %v2306_v24  ;;  %v900_v2 = vmul.f32 %v3048_v57, %v2298_v18  ;;  %v1000_v32 = vmul.f32 %v3051_v56, %v2300_v19  ;;  %v713_v28 = vmul.f32 %v2966_v38, %v2294_v16  ;;  %v3094_v42 = vld [vmem:[%s3369_s2] ss:$0 sm:$0xff] }
  0x91   : > { %v1169_v1 = vadd.f32 %v2444_v53, %v1131_v40  ;;  %v729_v13 = vadd.f32 %v697_v29, %v629_v35  ;;  %v542_v44 = vadd.f32 %v510_v27, %v442_v59  ;;  %v1047_v37 = vadd.f32 %v1015_v20, %v947_v63  ;;  %v3102_v40 = vld [vmem:[%s2281_s25 + $0x182] sm:$0xff] }
  0x92   : > { %v295_v33 = vmul.f32 %v2876_v62, %v2283_v9  ;;  %v395_v22 = vmul.f32 %v2879_v7, %v2285_v10  ;;  %v495_v45 = vmul.f32 %v2894_v58, %v2287_v11  ;;  %v813_v14 = vmul.f32 %v2981_v21, %v2296_v17  ;;  %v3082_v62 = vld [vmem:[%s2281_s25 + $0x181] sm:$0xff] }
  0x93   : > { %v1201_v34 = vmax.f32 %v1169_v1, 0.0  ;;  %v829_v5 = vadd.f32 %v797_v26, %v729_v13  ;;  %v645_v53 = vadd.f32 %v613_v50, %v542_v44  ;;  %v1147_v55 = vadd.f32 %v1115_v52, %v1047_v37  ;;  %v3113_v1 = vld [vmem:[%s2281_s25 + $0xc8] sm:$0xff] }
  0x94   : > { %v1100_v30 = vmul.f32 %v3072_v6, %v2306_v24  ;;  %v427_v7 = vadd.f32 %v395_v22, %v295_v33  ;;  %v598_v58 = vmul.f32 %v2992_v36, %v2289_v12  ;;  %v916_v29 = vmul.f32 %v3079_v61, %v2298_v18  ;;  %v3116_v13 = vld [vmem:[%s2281_s25 + $0xc9] sm:$0xff] }
  0x95   : > { %2005 = vmatmul.mubr.msk.f32.gmra.mxu0 %vm1229_vm0, %v1201_v34  ;;  %v932_v23 = vadd.f32 %v900_v2, %v829_v5  ;;  %v745_v20 = vadd.f32 %v713_v28, %v645_v53  ;;  %v1016_v4 = vmul.f32 %v3082_v62, %v2300_v19  ;;  %v1185_v47 = vadd.f32 %v3094_v42, %v1147_v55  ;;  %v3129_v34 = vld [vmem:[%s2281_s25 + $0xca] sm:$0xff] }
  0x96   : > { %v527_v41 = vadd.f32 %v495_v45, %v427_v7  ;;  %v698_v49 = vmul.f32 %v2995_v46, %v2294_v16  ;;  %v311_v48 = vmul.f32 %v2905_v60, %v2283_v9  ;;  %v411_v35 = vmul.f32 %v2911_v0, %v2285_v10 }
  0x97   : > { %v1032_v26 = vadd.f32 %v1000_v32, %v932_v23  ;;  %v845_v27 = vadd.f32 %v813_v14, %v745_v20  ;;  %v511_v59 = vmul.f32 %v2929_v25, %v2287_v11  ;;  %v1217_v50 = vmax.f32 %v1185_v47, 0.0 }
  0x98   : > { %v1116_v63 = vmul.f32 %v3102_v40, %v2306_v24  ;;  %v630_v52 = vadd.f32 %v598_v58, %v527_v41  ;;  %v798_v2 = vmul.f32 %v3008_v31, %v2296_v17  ;;  %v443_v44 = vadd.f32 %v411_v35, %v311_v48  ;;  %v3147_v41 = vld [vmem:[%s2281_s25 + $0x189] sm:$0xff] }
  0x99   : > { %v1132_v60 = vadd.f32 %v1100_v30, %v1032_v26  ;;  %v948_v32 = vadd.f32 %v916_v29, %v845_v27  ;;  %v614_v0 = vmul.f32 %v3021_v43, %v2289_v12  ;;  %2029 = vmatmul.mubr.msk.f32.gmra.mxu1 %vm1229_vm0, %v1217_v50  ;;  %v901_v28 = vmul.f32 %v3113_v1, %v2298_v18  ;;  %v1832_v50 = vld [vmem:[%s2281_s25 + $0xd8] sm:$0xff] }
  0x9a   : > { %v730_v25 = vadd.f32 %v698_v49, %v630_v52  ;;  %v1001_v37 = vmul.f32 %v3116_v13, %v2300_v19  ;;  %v714_v33 = vmul.f32 %v3026_v54, %v2294_v16  ;;  %v543_v5 = vadd.f32 %v511_v59, %v443_v44 }
  0x9b   : > { %v1170_v22 = vadd.f32 %v3094_v42, %v1132_v60  ;;  %v1048_v45 = vadd.f32 %v1016_v4, %v948_v32  ;;  %v296_v53 = vmul.f32 %v2932_v3, %v2283_v9  ;;  %v1101_v55 = vmul.f32 %v3129_v34, %v2306_v24  ;;  %v3142_v4 = vld [vmem:[%s2281_s25 + $0x188] sm:$0xff] }
  0x9c   : > { %v830_v14 = vadd.f32 %v798_v2, %v730_v25  ;;  %v396_v30 = vmul.f32 %v2935_v15, %v2285_v10  ;;  %v496_v7 = vmul.f32 %v2956_v8, %v2287_v11  ;;  %v646_v20 = vadd.f32 %v614_v0, %v543_v5  ;;  %v3168_v0 = vld [vmem:[%s2281_s25 + $0x18a] sm:$0xff] }
  0x9d   : > { %v1202_v58 = vmax.f32 %v1170_v22, 0.0  ;;  %v1148_v23 = vadd.f32 %v1116_v63, %v1048_v45  ;;  %v814_v29 = vmul.f32 %v3045_v39, %v2296_v17  ;;  %v917_v47 = vmul.f32 %v3142_v4, %v2298_v18  ;;  %v1864_v63 = vld [vmem:[%s2281_s25 + $0xd9] sm:$0xff] }
  0x9e   : > { %v933_v3 = vadd.f32 %v901_v28, %v830_v14  ;;  %v428_v15 = vadd.f32 %v396_v30, %v296_v53  ;;  %v599_v8 = vmul.f32 %v3048_v57, %v2289_v12  ;;  %v746_v48 = vadd.f32 %v714_v33, %v646_v20  ;;  %v1896_v45 = vld [vmem:[%s2281_s25 + $0xda] sm:$0xff] }
  0x9f   : > { %2007 = vmatprep.mubr.msk.f32.mxu0 %vm1229_vm0, %v1202_v58  ;;  %v1186_v49 = vadd.f32 %v3094_v42, %v1148_v23  ;;  %v1017_v26 = vmul.f32 %v3147_v41, %v2300_v19  ;;  %v699_v27 = vmul.f32 %v3051_v56, %v2294_v16  ;;  %v312_v52 = vmul.f32 %v2963_v51, %v2283_v9 }
  0xa0   : > { %v1033_v35 = vadd.f32 %v1001_v37, %v933_v3  ;;  %v528_v59 = vadd.f32 %v496_v7, %v428_v15  ;;  %v412_v57 = vmul.f32 %v2966_v38, %v2285_v10  ;;  %v846_v60 = vadd.f32 %v814_v29, %v746_v48  ;;  %v1912_v48 = vld [vmem:[%s2281_s25 + $0x19a] sm:$0xff] }
  0xa1   : > { %v1218_v2 = vmax.f32 %v1186_v49, 0.0  ;;  %v799_v32 = vmul.f32 %v3072_v6, %v2296_v17  ;;  %v512_v44 = vmul.f32 %v2981_v21, %v2287_v11  ;;  %v615_v51 = vmul.f32 %v3079_v61, %v2289_v12  ;;  %v1848_v61 = vld [vmem:[%s2281_s25 + $0x198] sm:$0xff] }
  0xa2   : > { %v1133_v56 = vadd.f32 %v1101_v55, %v1033_v35  ;;  %v631_v25 = vadd.f32 %v599_v8, %v528_v59  ;;  %v444_v28 = vadd.f32 %v412_v57, %v312_v52  ;;  %v949_v38 = vadd.f32 %v917_v47, %v846_v60  ;;  %v1880_v55 = vld [vmem:[%s2281_s25 + $0x199] sm:$0xff] }
  0xa3   : > { %2031 = vmatprep.mubr.msk.f32.mxu1 %vm1229_vm0, %v1218_v2  ;;  %v1117_v37 = vmul.f32 %v3168_v0, %v2306_v24  ;;  %v902_v6 = vmul.f32 %v1832_v50, %v2298_v18  ;;  %v1002_v21 = vmul.f32 %v1864_v63, %v2300_v19  ;;  %v715_v53 = vmul.f32 %v3082_v62, %v2294_v16  ;;  %v1833_v50 = vld [vmem:[%s2281_s25 + $0xe0] sm:$0xff] }
  0xa4   : > { %v1171_v33 = vadd.f32 %v3094_v42, %v1133_v56  ;;  %v731_v22 = vadd.f32 %v699_v27, %v631_v25  ;;  %v544_v5 = vadd.f32 %v512_v44, %v444_v28  ;;  %v1049_v14 = vadd.f32 %v1017_v26, %v949_v38  ;;  %v1897_v25 = vld [vmem:[%s2281_s25 + $0xe2] sm:$0xff] }
  0xa5   : > { %v297_v30 = vmul.f32 %v2992_v36, %v2283_v9  ;;  %v397_v7 = vmul.f32 %v2995_v46, %v2285_v10  ;;  %v497_v58 = vmul.f32 %v3008_v31, %v2287_v11  ;;  %v815_v3 = vmul.f32 %v3102_v40, %v2296_v17 }
  0xa6   : > { %v1203_v23 = vmax.f32 %v1171_v33, 0.0  ;;  %v831_v20 = vadd.f32 %v799_v32, %v731_v22  ;;  %v647_v29 = vadd.f32 %v615_v51, %v544_v5  ;;  %v1149_v62 = vadd.f32 %v1117_v37, %v1049_v14  ;;  %v1849_v37 = vld [vmem:[%s2281_s25 + $0x1a0] sm:$0xff] }
  0xa7   : > { %v1102_v47 = vmul.f32 %v1896_v45, %v2306_v24  ;;  %v429_v15 = vadd.f32 %v397_v7, %v297_v30  ;;  %v600_v36 = vmul.f32 %v3113_v1, %v2289_v12  ;;  %v918_v31 = vmul.f32 %v1848_v61, %v2298_v18  ;;  %v1881_v45 = vld [vmem:[%s2281_s25 + $0x1a1] sm:$0xff] }
  0xa8   : > { %2008 = vmatmul.mubr.msk.f32.gmra.mxu0 %vm1229_vm0, %v1203_v23  ;;  %v934_v46 = vadd.f32 %v902_v6, %v831_v20  ;;  %v747_v8 = vadd.f32 %v715_v53, %v647_v29  ;;  %v1018_v49 = vmul.f32 %v1880_v55, %v2300_v19  ;;  %v1187_v40 = vadd.f32 %v3094_v42, %v1149_v62  ;;  %v1913_v14 = vld [vmem:[%s2281_s25 + $0x1a2] sm:$0xff] }
  0xa9   : > { %v529_v26 = vadd.f32 %v497_v58, %v429_v15  ;;  %v700_v27 = vmul.f32 %v3116_v13, %v2294_v16  ;;  %v313_v35 = vmul.f32 %v3021_v43, %v2283_v9  ;;  %v413_v63 = vmul.f32 %v3026_v54, %v2285_v10  ;;  %v1865_v43 = vld [vmem:[%s2281_s25 + $0xe1] sm:$0xff]  ;;  %s2098_s25 = scalar_lea.vmem %s3316_s15, 4096 }
  0xaa   : > { %v1034_v1 = vadd.f32 %v1002_v21, %v934_v46  ;;  %v847_v59 = vadd.f32 %v815_v3, %v747_v8  ;;  %v513_v52 = vmul.f32 %v3045_v39, %v2287_v11  ;;  %v1219_v57 = vmax.f32 %v1187_v40, 0.0  ;;  %p2099_p12 = scmp.ne.s32.totalorder %s3316_s15, %s2098_s25  ;;  %p2106_p2 = scmp.lt.s32.totalorder %s2104_s7, %s2098_s25 }
  0xab   : > { %v1118_v2 = vmul.f32 %v1912_v48, %v2306_v24  ;;  %v632_v60 = vadd.f32 %v600_v36, %v529_v26  ;;  %v800_v13 = vmul.f32 %v3129_v34, %v2296_v17  ;;  %v445_v44 = vadd.f32 %v413_v63, %v313_v35 }
  0xac   : > { %v1134_v32 = vadd.f32 %v1102_v47, %v1034_v1  ;;  %v950_v9 = vadd.f32 %v918_v31, %v847_v59  ;;  %v616_v56 = vmul.f32 %v3142_v4, %v2289_v12  ;;  %2032 = vmatmul.mubr.msk.f32.gmra.mxu1 %vm1229_vm0, %v1219_v57  ;;  %v903_v11 = vmul.f32 %v1833_v50, %v2298_v18  ;;  %p2100_p13 = pnand %p2099_p12, %p2249_p4  ;;  %p2107_p3 = por %p2106_p2, %p2105_p1 }
  0xad   : > { %v732_v10 = vadd.f32 %v700_v27, %v632_v60  ;;  %v545_v28 = vadd.f32 %v513_v52, %v445_v44  ;;  %v716_v34 = vmul.f32 %v3147_v41, %v2294_v16  ;;  %v1003_v38 = vmul.f32 %v1865_v43, %v2300_v19 }
  0xae   : > { %v1172_v54 = vadd.f32 %v3094_v42, %v1134_v32  ;;  %v1050_v39 = vadd.f32 %v1018_v49, %v950_v9  ;;  %v816_v21 = vmul.f32 %v3168_v0, %v2296_v17  ;;  %v1103_v22 = vmul.f32 %v1897_v25, %v2306_v24  ;;  %p2101_p0 = pneg %p2100_p13 }
  0xaf   : > { %v832_v51 = vadd.f32 %v800_v13, %v732_v10  ;;  %v648_v6 = vadd.f32 %v616_v56, %v545_v28  ;;  %v919_v41 = vmul.f32 %v1849_v37, %v2298_v18  ;;  %v1019_v30 = vmul.f32 %v1881_v45, %v2300_v19  ;;  %v3241_v19 = vld [vmem:[%s3371_s4] ss:$0 sm:$0xff] }
  0xb0   : > { %v1204_v12 = vmax.f32 %v1172_v54, 0.0  ;;  %v1150_v4 = vadd.f32 %v1118_v2, %v1050_v39  ;;  %v1119_v7 = vmul.f32 %v1913_v14, %v2306_v24  ;;  %p2108_p5 = pnand %p2107_p3, %p2101_p0 }
  0xb1   : > { %v935_v33 = vadd.f32 %v903_v11, %v832_v51  ;;  %v748_v16 = vadd.f32 %v716_v34, %v648_v6 }
  0xb2   : > { %2010 = vmatprep.mubr.msk.f32.mxu0 %vm1229_vm0, %v1204_v12  ;;  %v1188_v5 = vadd.f32 %v3094_v42, %v1150_v4 }
  0xb3   : > { %v1035_v53 = vadd.f32 %v1003_v38, %v935_v33  ;;  %v848_v55 = vadd.f32 %v816_v21, %v748_v16 }
  0xb4   : > { %v1220_v61 = vmax.f32 %v1188_v5, 0.0 }
  0xb5   : > { %v1135_v17 = vadd.f32 %v1103_v22, %v1035_v53  ;;  %v951_v0 = vadd.f32 %v919_v41, %v848_v55 }
  0xb6   : > { %2034 = vmatprep.mubr.msk.f32.mxu1 %vm1229_vm0, %v1220_v61 }
  0xb7   : > { %v1173_v58 = vadd.f32 %v3094_v42, %v1135_v17  ;;  %v1051_v23 = vadd.f32 %v1019_v30, %v951_v0 }
  0xb9   : > { %v1205_v20 = vmax.f32 %v1173_v58, 0.0  ;;  %v1151_v29 = vadd.f32 %v1119_v7, %v1051_v23 }
  0xbb   : > { %2011 = vmatmul.mubr.msk.f32.gmra.mxu0 %vm1229_vm0, %v1205_v20  ;;  %v1189_v18 = vadd.f32 %v3094_v42, %v1151_v29 }
  0xbd   : > { %v1221_v3 = vmax.f32 %v1189_v18, 0.0 }
  0xbf   : > { %2035 = vmatmul.mubr.msk.f32.gmra.mxu1 %vm1229_vm0, %v1221_v3 }
  0xf7   : > { %v1991_v24 = vpop.f32.mrf.mxu0 }
  0xf8   : > { %v1398_v62 = vadd.f32 %v1991_v24, %v3241_v19 }
  0xf9   : > { %v1392_v47 = vpop.f32.mrf.mxu0 }
  0xfa   : > { %v1552_v15 = vmax.f32 %v1398_v62, 0.0  ;;  %v1393_v46 = vadd.f32 %v3241_v19, %v1392_v47 }
  0xfb   : > { %v2015_v36 = vpop.f32.mrf.mxu1 }
  0xfc   : > { %v1478_v42 = vadd.f32 %v2015_v36, %v3241_v19  ;;  %1584 = vst [vmem:[%s3248_s13 + $0x8] sm:$0xff] %v1552_v15  ;;  %v1551_v8 = vmax.f32 %v1393_v46, 0.0 }
  0xfd   : > { %v1472_v31 = vpop.f32.mrf.mxu1 }
  0xfe   : > { %v1568_v49 = vmax.f32 %v1478_v42, 0.0  ;;  %v1473_v48 = vadd.f32 %v3241_v19, %v1472_v31  ;;  %1583 = vst [vmem:[%s3248_s13] sm:$0xff] %v1551_v8 }
 0x100   : > { %1600 = vst [vmem:[%s3248_s13 + $0x88] sm:$0xff] %v1568_v49  ;;  %v1567_v40 = vmax.f32 %v1473_v48, 0.0 }
 0x102   : > { %1599 = vst [vmem:[%s3248_s13 + $0x80] sm:$0xff] %v1567_v40 }
 0x10a   : > { %v1994_v26 = vpop.f32.mrf.mxu0 }
 0x10b   : > { %v1408_v27 = vadd.f32 %v1994_v26, %v3241_v19 }
 0x10c   : > { %v1402_v35 = vpop.f32.mrf.mxu0 }
 0x10d   : > { %v1554_v1 = vmax.f32 %v1408_v27, 0.0  ;;  %v1403_v59 = vadd.f32 %v3241_v19, %v1402_v35 }
 0x10f   : > { %1586 = vst [vmem:[%s3248_s13 + $0x18] sm:$0xff] %v1554_v1  ;;  %v2018_v50 = vpop.f32.mrf.mxu1  ;;  %v1553_v63 = vmax.f32 %v1403_v59, 0.0 }
 0x110   : > { %v1488_v52 = vadd.f32 %v2018_v50, %v3241_v19 }
 0x111   : > { %1585 = vst [vmem:[%s3248_s13 + $0x10] sm:$0xff] %v1553_v63  ;;  %v1482_v57 = vpop.f32.mrf.mxu1 }
 0x112   : > { %v1570_v2 = vmax.f32 %v1488_v52, 0.0  ;;  %v1483_v60 = vadd.f32 %v3241_v19, %v1482_v57 }
 0x114   : > { %1602 = vst [vmem:[%s3248_s13 + $0x98] sm:$0xff] %v1570_v2  ;;  %v1569_v13 = vmax.f32 %v1483_v60, 0.0 }
 0x116   : > { %1601 = vst [vmem:[%s3248_s13 + $0x90] sm:$0xff] %v1569_v13 }
 0x11c   : > { %v1997_v32 = vpop.f32.mrf.mxu0 }
 0x11d   : > { %v1418_v9 = vadd.f32 %v1997_v32, %v3241_v19 }
 0x11e   : > { %v1412_v43 = vpop.f32.mrf.mxu0 }
 0x11f   : > { %v1556_v44 = vmax.f32 %v1418_v9, 0.0  ;;  %v1413_v56 = vadd.f32 %v3241_v19, %v1412_v43 }
 0x120   : > { %v2021_v10 = vpop.f32.mrf.mxu1 }
 0x121   : > { %1588 = vst [vmem:[%s3248_s13 + $0x28] sm:$0xff] %v1556_v44  ;;  %v1498_v11 = vadd.f32 %v2021_v10, %v3241_v19  ;;  %v1555_v54 = vmax.f32 %v1413_v56, 0.0 }
 0x122   : > { %v1492_v39 = vpop.f32.mrf.mxu1 }
 0x123   : > { %v1572_v25 = vmax.f32 %v1498_v11, 0.0  ;;  %1587 = vst [vmem:[%s3248_s13 + $0x20] sm:$0xff] %v1555_v54  ;;  %v1493_v28 = vadd.f32 %v3241_v19, %v1492_v39 }
 0x125   : > { %1604 = vst [vmem:[%s3248_s13 + $0xa8] sm:$0xff] %v1572_v25  ;;  %v1571_v34 = vmax.f32 %v1493_v28, 0.0 }
 0x127   : > { %1603 = vst [vmem:[%s3248_s13 + $0xa0] sm:$0xff] %v1571_v34 }
 0x12f   : > { %v2000_v51 = vpop.f32.mrf.mxu0 }
 0x130   : > { %v1428_v38 = vadd.f32 %v2000_v51, %v3241_v19 }
 0x131   : > { %v1422_v37 = vpop.f32.mrf.mxu0 }
 0x132   : > { %v1558_v12 = vmax.f32 %v1428_v38, 0.0  ;;  %v1423_v4 = vadd.f32 %v3241_v19, %v1422_v37 }
 0x134   : > { %1590 = vst [vmem:[%s3248_s13 + $0x38] sm:$0xff] %v1558_v12  ;;  %v2024_v6 = vpop.f32.mrf.mxu1  ;;  %v1557_v21 = vmax.f32 %v1423_v4, 0.0 }
 0x135   : > { %v1508_v33 = vadd.f32 %v2024_v6, %v3241_v19 }
 0x136   : > { %1589 = vst [vmem:[%s3248_s13 + $0x30] sm:$0xff] %v1557_v21  ;;  %v1502_v22 = vpop.f32.mrf.mxu1 }
 0x137   : > { %v1574_v45 = vmax.f32 %v1508_v33, 0.0  ;;  %v1503_v5 = vadd.f32 %v3241_v19, %v1502_v22 }
 0x139   : > { %1606 = vst [vmem:[%s3248_s13 + $0xb8] sm:$0xff] %v1574_v45  ;;  %v1573_v16 = vmax.f32 %v1503_v5, 0.0 }
 0x13b   : > { %1605 = vst [vmem:[%s3248_s13 + $0xb0] sm:$0xff] %v1573_v16 }
 0x142   : > { %v2003_v41 = vpop.f32.mrf.mxu0 }
 0x143   : > { %v1438_v53 = vadd.f32 %v2003_v41, %v3241_v19 }
 0x144   : > { %v1432_v14 = vpop.f32.mrf.mxu0 }
 0x145   : > { %v1560_v61 = vmax.f32 %v1438_v53, 0.0  ;;  %v1433_v55 = vadd.f32 %v3241_v19, %v1432_v14 }
 0x147   : > { %1592 = vst [vmem:[%s3248_s13 + $0x48] sm:$0xff] %v1560_v61  ;;  %v2027_v30 = vpop.f32.mrf.mxu1  ;;  %v1559_v17 = vmax.f32 %v1433_v55, 0.0 }
 0x148   : > { %v1518_v0 = vadd.f32 %v2027_v30, %v3241_v19 }
 0x149   : > { %1591 = vst [vmem:[%s3248_s13 + $0x40] sm:$0xff] %v1559_v17  ;;  %v1512_v7 = vpop.f32.mrf.mxu1 }
 0x14a   : > { %v1576_v58 = vmax.f32 %v1518_v0, 0.0  ;;  %v1513_v23 = vadd.f32 %v3241_v19, %v1512_v7 }
 0x14c   : > { %1608 = vst [vmem:[%s3248_s13 + $0xc8] sm:$0xff] %v1576_v58  ;;  %v1575_v20 = vmax.f32 %v1513_v23, 0.0 }
 0x14e   : > { %1607 = vst [vmem:[%s3248_s13 + $0xc0] sm:$0xff] %v1575_v20 }
 0x155   : > { %v2006_v29 = vpop.f32.mrf.mxu0 }
 0x156   : > { %v1448_v18 = vadd.f32 %v2006_v29, %v3241_v19 }
 0x157   : > { %v1442_v3 = vpop.f32.mrf.mxu0 }
 0x158   : > { %v1562_v24 = vmax.f32 %v1448_v18, 0.0  ;;  %v1443_v62 = vadd.f32 %v3241_v19, %v1442_v3 }
 0x159   : > { %v2030_v47 = vpop.f32.mrf.mxu1 }
 0x15a   : > { %1594 = vst [vmem:[%s3248_s13 + $0x58] sm:$0xff] %v1562_v24  ;;  %v1561_v15 = vmax.f32 %v1443_v62, 0.0  ;;  %v1528_v36 = vadd.f32 %v2030_v47, %v3241_v19 }
 0x15b   : > { %v1522_v46 = vpop.f32.mrf.mxu1 }
 0x15c   : > { %1593 = vst [vmem:[%s3248_s13 + $0x50] sm:$0xff] %v1561_v15  ;;  %v1578_v42 = vmax.f32 %v1528_v36, 0.0  ;;  %v1523_v8 = vadd.f32 %v3241_v19, %v1522_v46 }
 0x15e   : > { %1610 = vst [vmem:[%s3248_s13 + $0xd8] sm:$0xff] %v1578_v42  ;;  %v1577_v31 = vmax.f32 %v1523_v8, 0.0 }
 0x160   : > { %1609 = vst [vmem:[%s3248_s13 + $0xd0] sm:$0xff] %v1577_v31 }
 0x168   : > { %v2009_v49 = vpop.f32.mrf.mxu0 }
 0x169   : > { %v1458_v48 = vadd.f32 %v2009_v49, %v3241_v19 }
 0x16a   : > { %v1452_v40 = vpop.f32.mrf.mxu0 }
 0x16b   : > { %v1564_v26 = vmax.f32 %v1458_v48, 0.0  ;;  %v1453_v27 = vadd.f32 %v3241_v19, %v1452_v40 }
 0x16c   : > { %v2033_v35 = vpop.f32.mrf.mxu1 }
 0x16d   : > { %1596 = vst [vmem:[%s3248_s13 + $0x68] sm:$0xff] %v1564_v26  ;;  %v1563_v1 = vmax.f32 %v1453_v27, 0.0  ;;  %v1538_v59 = vadd.f32 %v2033_v35, %v3241_v19 }
 0x16e   : > { %v1532_v50 = vpop.f32.mrf.mxu1 }
 0x16f   : > { %1595 = vst [vmem:[%s3248_s13 + $0x60] sm:$0xff] %v1563_v1  ;;  %v1580_v63 = vmax.f32 %v1538_v59, 0.0  ;;  %v1533_v52 = vadd.f32 %v3241_v19, %v1532_v50 }
 0x171   : > { %1612 = vst [vmem:[%s3248_s13 + $0xe8] sm:$0xff] %v1580_v63  ;;  %v1579_v57 = vmax.f32 %v1533_v52, 0.0 }
 0x173   : > { %1611 = vst [vmem:[%s3248_s13 + $0xe0] sm:$0xff] %v1579_v57 }
 0x17b   : > { %v2012_v2 = vpop.f32.mrf.mxu0 }
 0x17c   : > { %v1468_v60 = vadd.f32 %v2012_v2, %v3241_v19 }
 0x17d   : > { %v1462_v13 = vpop.f32.mrf.mxu0 }
 0x17e   : > { %v1566_v32 = vmax.f32 %v1468_v60, 0.0  ;;  %v1463_v9 = vadd.f32 %v3241_v19, %v1462_v13 }
 0x17f   : > { %v2036_v43 = vpop.f32.mrf.mxu1 }
 0x180   : > { %1598 = vst [vmem:[%s3248_s13 + $0x78] sm:$0xff] %v1566_v32  ;;  %v1565_v44 = vmax.f32 %v1463_v9, 0.0  ;;  %v1548_v56 = vadd.f32 %v2036_v43, %v3241_v19 }
 0x181   : > { %v1542_v10 = vpop.f32.mrf.mxu1 }
 0x182   : > { %1597 = vst [vmem:[%s3248_s13 + $0x70] sm:$0xff] %v1565_v44  ;;  %v1582_v11 = vmax.f32 %v1548_v56, 0.0  ;;  %v1543_v54 = vadd.f32 %v3241_v19, %v1542_v10 }
 0x184   : > { %1614 = vst [vmem:[%s3248_s13 + $0xf8] sm:$0xff] %v1582_v11  ;;  %v1581_v39 = vmax.f32 %v1543_v54, 0.0 }
 0x186   : > { %1613 = vst [vmem:[%s3248_s13 + $0xf0] sm:$0xff] %v1581_v39 }
 0x187   : > { %2111 = shalt.err (!%p2108_p5)
}
 0x188   : > { %s2112_s8 = scalar_lea.hbm %s3314_s24, 4096  ;;  %s2116_s11 = scalar_lea.hbm %s3372_s5, 8192 }
 0x189   : > { %p2113_p6 = scmp.ne.s32.totalorder %s3314_s24, %s2112_s8  ;;  %p2117_p10 = scmp.lt.s32.totalorder %s3314_s24, %s3372_s5 }
 0x18a   : > { %p2118_p11 = scmp.lt.s32.totalorder %s2116_s11, %s2112_s8 }
 0x18b   : > { %p2114_p7 = pnand %p2113_p6, %p2249_p4 }
 0x18c   : > { %p2119_p12 = por %p2118_p11, %p2117_p10 }
 0x18d   : > { %p2115_p9 = pneg %p2114_p7 }
 0x18f   : > { %p2120_p13 = pnand %p2119_p12, %p2115_p9 }
 0x191   : > { %2123 = shalt.err (!%p2120_p13)
}
 0x192   : > { %s2177_s14 = smov 128   ;;  %s2178_s16 = smov 8  }
 0x193   : > { %2040 = dma.vmem_to_hbm [thread:$0]  (%p2249_p4), %s3316_s15, 4096, %s3314_s24, %s3322_s21, %s2177_s14, %s2177_s14, %s2178_s16  }
 0x194 PF: > { %p2046_p0 = scmp.ge.s32.totalorder %s2174_s23, 2  ;;  %s1647_s17 = sand.u32 1, %s2154_s18  }
 0x195   : > { %s1648_s25 = scalar_lea.sflag [#allocation3], %s1647_s17 }
 0x196   : > { %p2043_p1 = pnand %p2046_p0, %p2256_p8 }
 0x198   : > { %p2044_p2 = pneg %p2043_p1 }
 0x19a   : > { %2149 = dma.done.wait (%p2044_p2), %s1648_s25, 4096  }
 0x19b   : > { %2151 = vsyncadd (%p2044_p2), %s1648_s25, 4294963200  ;;  %s18_s23 = sadd.s32 1, %s2174_s23   ;;  %s3375_s18 = smov %s2158_s19 }
 0x19c   : > { %p15_p3 = scmp.ge.s32.totalorder %s18_s23, 4   ;;  %s3376_s19 = smov %s2162_s20 }
 0x19d   : > { %s3377_s20 = smov %s2262_s6  ;;  %s3378_s21 = smov %s2170_s22 }
 0x19e   : > { %s3379_s22 = smov %s3381_s26  ;;  %17 = sbr.rel (!%p15_p3) target bundleno = 4 (0x4), region = 78 }
 0x1a3   :  { %1653 = vsyncpa [#allocation3], 1 }
 0x1a4   :  { %1655 = vsyncpa [#allocation3 + $0x1], 1 }

</bundles_post_ra>
